<compile_context>
chip_gen: v7x
topology: tpu7x:2x2x1
jax: 0.10.0
libtpu: 0.0.40
codegen_flags: <defaults>
</compile_context>

<pallas_src>
import numpy as np
import jax
import jax.numpy as jnp
from jax.experimental import pallas as pl
from jax.experimental.pallas import tpu as pltpu


def ffn_kernel(x_ref, w1_ref, b1_ref, w2_ref, b2_ref, o_ref):
    # x_ref : (tm, C)   bf16
    # w1_ref: (C, 4C)   bf16     b1_ref: (1, 4C) f32
    # w2_ref: (4C, C)   bf16     b2_ref: (1, C)  f32
    # o_ref : (tm, C)   f32
    h = jnp.dot(x_ref[...], w1_ref[...], preferred_element_type=jnp.float32)
    h = jnp.maximum(h + b1_ref[...], 0.0)            # Linear1 bias + ReLU (f32, VPU)
    h = h.astype(jnp.bfloat16)                       # bf16 operand for 2nd MXU pass
    o = jnp.dot(h, w2_ref[...], preferred_element_type=jnp.float32)
    o_ref[...] = o + b2_ref[...]                     # Linear2 bias; Dropout(p=0) = identity


def feedforward_forward(x, w1, b1, w2, b2, *, tm=128):
    """x: (B, T, C) f32; w1: (C, 4C); b1: (4C,); w2: (4C, C); b2: (C,).

    Returns (B, T, C) f32 output of Linear -> ReLU -> Linear -> Dropout(p=0).
    """
    B, T, C = x.shape
    H = w1.shape[1]
    M = B * T
    tm = min(tm, M)
    assert M % tm == 0, "B*T must be divisible by the row tile"
    assert C % 128 == 0 and H % 128 == 0, "feature dims must be lane-dense"

    # bf16 MXU operands (halves HBM/VMEM bytes, native MXU dtype); biases f32.
    x2 = x.reshape(M, C).astype(jnp.bfloat16)
    w1b = w1.astype(jnp.bfloat16)
    w2b = w2.astype(jnp.bfloat16)
    b1r = b1.reshape(1, H).astype(jnp.float32)
    b2r = b2.reshape(1, C).astype(jnp.float32)

    grid_spec = pltpu.PrefetchScalarGridSpec(
        num_scalar_prefetch=0,
        grid=(M // tm,),
        in_specs=[
            pl.BlockSpec((tm, C), lambda i: (i, 0)),   # x rows, tiled
            pl.BlockSpec((C, H), lambda i: (0, 0)),    # W1, resident
            pl.BlockSpec((1, H), lambda i: (0, 0)),    # b1, resident
            pl.BlockSpec((H, C), lambda i: (0, 0)),    # W2, resident
            pl.BlockSpec((1, C), lambda i: (0, 0)),    # b2, resident
        ],
        out_specs=pl.BlockSpec((tm, C), lambda i: (i, 0)),
    )

    out = pl.pallas_call(
        ffn_kernel,
        out_shape=jax.ShapeDtypeStruct((M, C), jnp.float32),
        grid_spec=grid_spec,
        compiler_params=pltpu.CompilerParams(dimension_semantics=("parallel",)),
    )(x2, w1b, b1r, w2b, b2r)
    return out.reshape(B, T, C)


def feedforward_reference_bf16(x, w1, b1, w2, b2):
    """Reference with the same bf16-operand / f32-accumulate recipe as the kernel."""
    B, T, C = x.shape
    h = jnp.dot(x.reshape(-1, C).astype(jnp.bfloat16), w1.astype(jnp.bfloat16),
                preferred_element_type=jnp.float32)
    h = jnp.maximum(h + b1[None, :], 0.0).astype(jnp.bfloat16)
    o = jnp.dot(h, w2.astype(jnp.bfloat16), preferred_element_type=jnp.float32)
    return (o + b2[None, :]).reshape(B, T, C)


def feedforward_reference_f32(x, w1, b1, w2, b2):
    """Pure-f32 reference matching the PyTorch module semantics (dropout p=0)."""
    B, T, C = x.shape
    h = jnp.maximum(x.reshape(-1, C) @ w1 + b1[None, :], 0.0)
    return (h @ w2 + b2[None, :]).reshape(B, T, C)


if __name__ == "__main__":
    embed_size = 256          # C (module's embed_size)
    hidden = 4 * embed_size   # 1024
    B, T = 2, 128             # batch, sequence length

    key = jax.random.PRNGKey(0)
    kx, k1, kb1, k2, kb2 = jax.random.split(key, 5)
    x = jax.random.normal(kx, (B, T, embed_size), jnp.float32)
    # nn.Linear-equivalent weights, stored transposed as (in, out).
    w1 = 0.02 * jax.random.normal(k1, (embed_size, hidden), jnp.float32)
    b1 = 0.01 * jax.random.normal(kb1, (hidden,), jnp.float32)
    w2 = 0.02 * jax.random.normal(k2, (hidden, embed_size), jnp.float32)
    b2 = 0.01 * jax.random.normal(kb2, (embed_size,), jnp.float32)

    out = feedforward_forward(x, w1, b1, w2, b2)
    jax.block_until_ready(out)

    # Tight check against the precision-matched reference.
    ref_m = feedforward_reference_bf16(x, w1, b1, w2, b2)
    np.testing.assert_allclose(np.asarray(out), np.asarray(ref_m), rtol=2e-3, atol=2e-3)
    # Loose check against the pure-f32 module semantics (bf16 operand rounding).
    ref_f = feedforward_reference_f32(x, w1, b1, w2, b2)
    np.testing.assert_allclose(np.asarray(out), np.asarray(ref_f), rtol=5e-2, atol=5e-2)

    print("KERNEL_OK")
</pallas_src>

<mosaic_0001>
module attributes {stable_mosaic.version = 11 : i64} {
  func.func @ffn_kernel(%arg0: i32, %arg1: memref<128x256xbf16, #tpu.memory_space<vmem>>, %arg2: memref<256x1024xbf16, #tpu.memory_space<vmem>>, %arg3: memref<1x1024xf32, #tpu.memory_space<vmem>>, %arg4: memref<1024x256xbf16, #tpu.memory_space<vmem>>, %arg5: memref<1x256xf32, #tpu.memory_space<vmem>>, %arg6: memref<128x256xf32, #tpu.memory_space<vmem>>) attributes {dimension_semantics = [#tpu.dimension_semantics<parallel>], iteration_bounds = array<i64: 2>, scalar_prefetch = 0 : i64, scratch_operands = 0 : i64, tpu.core_type = #tpu.core_type<tc>, window_params = [{transform_indices = @transform_0, window_bounds = array<i64: 128, 256>}, {pipeline_mode = #tpu.pipeline_mode<synchronous>, transform_indices = @transform_1, window_bounds = array<i64: 256, 1024>}, {pipeline_mode = #tpu.pipeline_mode<synchronous>, transform_indices = @transform_2, window_bounds = array<i64: 1, 1024>}, {pipeline_mode = #tpu.pipeline_mode<synchronous>, transform_indices = @transform_3, window_bounds = array<i64: 1024, 256>}, {pipeline_mode = #tpu.pipeline_mode<synchronous>, transform_indices = @transform_4, window_bounds = array<i64: 1, 256>}, {transform_indices = @transform_5, window_bounds = array<i64: 128, 256>}]} {
    %c0 = arith.constant 0 : index
    %c0_0 = arith.constant 0 : index
    %0 = vector.load %arg1[%c0, %c0_0] : memref<128x256xbf16, #tpu.memory_space<vmem>>, vector<128x256xbf16>
    %c0_1 = arith.constant 0 : index
    %c0_2 = arith.constant 0 : index
    %1 = vector.load %arg2[%c0_1, %c0_2] : memref<256x1024xbf16, #tpu.memory_space<vmem>>, vector<256x1024xbf16>
    %cst = arith.constant dense<0.000000e+00> : vector<128x1024xf32>
    %2 = tpu.matmul %0, %1, %cst {dimension_numbers = #tpu.dot_dimension_numbers<[1], [0], [0], [1], [0, 0, 1, 1], [], []>} : vector<128x256xbf16>, vector<256x1024xbf16>, vector<128x1024xf32> -> vector<128x1024xf32>
    %c0_3 = arith.constant 0 : index
    %c0_4 = arith.constant 0 : index
    %3 = vector.load %arg3[%c0_3, %c0_4] : memref<1x1024xf32, #tpu.memory_space<vmem>>, vector<1x1024xf32>
    %4 = vector.broadcast %3 : vector<1x1024xf32> to vector<128x1024xf32>
    %5 = arith.addf %2, %4 : vector<128x1024xf32>
    %cst_5 = arith.constant 0.000000e+00 : f32
    %6 = vector.broadcast %cst_5 : f32 to vector<128x1024xf32>
    %7 = arith.maximumf %5, %6 : vector<128x1024xf32>
    %8 = arith.truncf %7 : vector<128x1024xf32> to vector<128x1024xbf16>
    %c0_6 = arith.constant 0 : index
    %c0_7 = arith.constant 0 : index
    %9 = vector.load %arg4[%c0_6, %c0_7] : memref<1024x256xbf16, #tpu.memory_space<vmem>>, vector<1024x256xbf16>
    %cst_8 = arith.constant dense<0.000000e+00> : vector<128x256xf32>
    %10 = tpu.matmul %8, %9, %cst_8 {dimension_numbers = #tpu.dot_dimension_numbers<[1], [0], [0], [1], [0, 0, 1, 1], [], []>} : vector<128x1024xbf16>, vector<1024x256xbf16>, vector<128x256xf32> -> vector<128x256xf32>
    %c0_9 = arith.constant 0 : index
    %c0_10 = arith.constant 0 : index
    %11 = vector.load %arg5[%c0_9, %c0_10] : memref<1x256xf32, #tpu.memory_space<vmem>>, vector<1x256xf32>
    %12 = vector.broadcast %11 : vector<1x256xf32> to vector<128x256xf32>
    %13 = arith.addf %10, %12 : vector<128x256xf32>
    %c0_11 = arith.constant 0 : index
    %c0_12 = arith.constant 0 : index
    %14 = vector.load %arg6[%c0_11, %c0_12] : memref<128x256xf32, #tpu.memory_space<vmem>>, vector<128x256xf32>
    tpu.vector_store %arg6[%c0_11, %c0_12], %13 {strides = array<i32>} : memref<128x256xf32, #tpu.memory_space<vmem>>, vector<128x256xf32>,
    return
  }
  func.func @transform_0(%arg0: i32) -> (i32, i32) {
    %c0_i32 = arith.constant 0 : i32
    %c0_i32_0 = arith.constant 0 : i32
    return %arg0, %c0_i32 : i32, i32
  }
  func.func @transform_1(%arg0: i32) -> (i32, i32) {
    %c0_i32 = arith.constant 0 : i32
    %c0_i32_0 = arith.constant 0 : i32
    %c0_i32_1 = arith.constant 0 : i32
    return %c0_i32, %c0_i32_0 : i32, i32
  }
  func.func @transform_2(%arg0: i32) -> (i32, i32) {
    %c0_i32 = arith.constant 0 : i32
    %c0_i32_0 = arith.constant 0 : i32
    %c0_i32_1 = arith.constant 0 : i32
    return %c0_i32, %c0_i32_0 : i32, i32
  }
  func.func @transform_3(%arg0: i32) -> (i32, i32) {
    %c0_i32 = arith.constant 0 : i32
    %c0_i32_0 = arith.constant 0 : i32
    %c0_i32_1 = arith.constant 0 : i32
    return %c0_i32, %c0_i32_0 : i32, i32
  }
  func.func @transform_4(%arg0: i32) -> (i32, i32) {
    %c0_i32 = arith.constant 0 : i32
    %c0_i32_0 = arith.constant 0 : i32
    %c0_i32_1 = arith.constant 0 : i32
    return %c0_i32, %c0_i32_0 : i32, i32
  }
  func.func @transform_5(%arg0: i32) -> (i32, i32) {
    %c0_i32 = arith.constant 0 : i32
    %c0_i32_0 = arith.constant 0 : i32
    return %arg0, %c0_i32 : i32, i32
  }
}

</mosaic_0001>

<bundles_post_ra>
// kernel: tpu_custom_call.1
= control target key start
LH: loop header
LB: loop body
LE: loop exit
PB: predicated region body
PF: predicated region fallthrough
CT: control target
= control target key end

     0   :  { %10 = vsyncpa [#allocation3], 0  ;;  %s4804_s0 = inlined_call_operand.hbm [shape: bf16[256,256], index: 0, kind: input, shape index: {}]   ;;  %s4805_s1 = inlined_call_operand.hbm [shape: bf16[256,1024], index: 1, kind: input, shape index: {}]   ;;  %s4806_s2 = inlined_call_operand.hbm [shape: f32[1,1024], index: 2, kind: input, shape index: {}]   ;;  %s4807_s3 = inlined_call_operand.hbm [shape: bf16[1024,256], index: 3, kind: input, shape index: {}]   ;;  %s4808_s4 = inlined_call_operand.vmem [shape: f32[1,256], index: 4, kind: input, shape index: {}]   ;;  %s4809_s5 = inlined_call_operand.hbm [shape: f32[256,256], index: 5, kind: output, shape index: {}]  }
   0x1   :  { %12 = vsyncpa [#allocation3 + $0x1], 0 }
   0x2   :  { %13 = vsyncpa [#allocation6], 0 }
   0x3   :  { %14 = vsyncpa [#allocation9], 0 }
   0x4   :  { %15 = vsyncpa [#allocation4], 0 }
   0x5   :  { %17 = vsyncpa [#allocation4 + $0x1], 0  ;;  %s4177_s18 = smov 0   ;;  %s4179_s19 = smov 0  }
   0x6   :  { %s4181_s20 = smov 0   ;;  %s4183_s21 = smov 0  }
   0x7 LB: > { %s4198_s22 = sadd.s32 4294967295, %s4134_s21   ;;  %s3219_s23 = sadd.s32 4294967294, %s4134_s21   ;;  %s4134_s21 = sphi %s4183_s21, %s4832_s21   ;;  %s4130_s20 = sphi %s4181_s20, %s4831_s20   ;;  %s4126_s19 = sphi %s4179_s19, %s4830_s19   ;;  %s4122_s18 = sphi %s4177_s18, %s4829_s18  }
   0x8   : > { %p43_p0 = scmp.ne.s32.totalorder %s4126_s19, %s4122_s18  ;;  %p4810_p1 = scmp.eq.s32.totalorder %s4198_s22, 0 }
   0x9   : > { %p157_p3 = scmp.eq.s32.totalorder %s3219_s23, 1  ;;  %p3220_p5 = scmp.ge.s32.totalorder %s4134_s21, 1 }
   0xa   : > { %p4207_p4 = por %p4810_p1, %p43_p0  ;;  %p164_p7 = scmp.lt.s32.totalorder %s4134_s21, 3 }
   0xb   : > { %p4212_p6 = por %p157_p3, %p43_p0  ;;  %s4136_s27 = smov [#allocation5]  }
   0xc   : > { %s4813_s24 = scalar_select %p4207_p4, 1, 0 }
   0xd   : > { %s4814_s25 = scalar_select %p4212_p6, 1, 0 }
   0xe   : > { %p4217_p8 = pnand %p3220_p5, %p164_p7  ;;  %s176_s28 = sshll.u32 %s4136_s27, 4  ;;  %s4221_s28 = int_to_ptr.vmem [resolvable:$true] %s176_s28 }
   0xf   : > { %s4137_s30 = smov [#allocation7]   ;;  %s4138_s7 = smov [#allocation8]  }
  0x10   : > { %s4815_s26 = scalar_select %p4217_p8, 1, 0 }
  0x11   : > { %p3661_p9 = pneg %p4217_p8  ;;  %s190_s6 = sshll.u32 %s4137_s30, 4  ;;  %s4232_s6 = int_to_ptr.vmem [resolvable:$true] %s190_s6 }
  0x12   : > { %s4234_s8 = sshll.u32 %s4138_s7, 4  ;;  %s3946_s11 = scalar_lea.hbm %s4805_s1, 16384  ;;  %s201_s8 = int_to_ptr.vmem [resolvable:$true] %s4234_s8 }
  0x13   : > { %p4228_p11 = pnand %p3661_p9, %p4810_p1  ;;  %p3947_p12 = scmp.ne.s32.totalorder %s4805_s1, %s3946_s11 }
  0x14   : > { %p3953_p5 = scmp.lt.u32.totalorder %s3946_s11, %s4805_s1 }
  0x15   : > { %p4244_p13 = pneg %p4228_p11 }
  0x17   : > { %p3949_p0 = pnand %p4244_p13, %p3947_p12 }
  0x19   : > { %p3950_p3 = pneg %p3949_p0 }
  0x1b   : > { %p3955_p7 = pnand %p3953_p5, %p3950_p3 }
  0x1d   : > { %3958 = shalt.err (!%p3955_p7)
}
  0x1e   : > { %s3959_s17 = scalar_lea.vmem %s4221_s28, 16384  ;;  %p3967_p2 = scmp.lt.s32.totalorder %s4221_s28, %s4221_s28 }
  0x1f   : > { %p3960_p9 = scmp.ne.s32.totalorder %s4221_s28, %s3959_s17  ;;  %p3968_p6 = scmp.lt.s32.totalorder %s3959_s17, %s3959_s17 }
  0x21   : > { %p3962_p10 = pnand %p3960_p9, %p4244_p13  ;;  %p3969_p12 = por %p3968_p6, %p3967_p2 }
  0x23   : > { %p3963_p1 = pneg %p3962_p10 }
  0x25   : > { %p3970_p0 = pnand %p3969_p12, %p3963_p1 }
  0x27   : > { %3973 = shalt.err (!%p3970_p0)
}
  0x28   : > { %s4139_s23 = smov 512   ;;  %s4140_s27 = smov 32  }
  0x29   : > { %3664 = dma.hbm_to_vmem [thread:$0]  (!%p4228_p11), %s4805_s1, 16384, %s4221_s28, [#allocation6], %s4139_s23, %s4139_s23, %s4140_s27  }
  0x2a   : > { %s3974_s11 = scalar_lea.hbm %s4806_s2, 128 }
  0x2b   : > { %p3975_p2 = scmp.ne.s32.totalorder %s4806_s2, %s3974_s11  ;;  %p3981_p10 = scmp.lt.u32.totalorder %s3974_s11, %s4806_s2 }
  0x2d   : > { %p3977_p1 = pnand %p3975_p2, %p4244_p13 }
  0x2f   : > { %p3978_p6 = pneg %p3977_p1 }
  0x31   : > { %p3983_p3 = pnand %p3981_p10, %p3978_p6 }
  0x33   : > { %3986 = shalt.err (!%p3983_p3)
}
  0x34   : > { %s3987_s28 = scalar_lea.vmem %s4232_s6, 128  ;;  %p3995_p12 = scmp.lt.s32.totalorder %s4232_s6, %s4232_s6 }
  0x35   : > { %p3988_p5 = scmp.ne.s32.totalorder %s4232_s6, %s3987_s28  ;;  %p3996_p0 = scmp.lt.s32.totalorder %s3987_s28, %s3987_s28 }
  0x37   : > { %p3990_p7 = pnand %p3988_p5, %p4244_p13  ;;  %p3997_p2 = por %p3996_p0, %p3995_p12 }
  0x39   : > { %p3991_p9 = pneg %p3990_p7 }
  0x3b   : > { %p3998_p1 = pnand %p3997_p2, %p3991_p9 }
  0x3d   : > { %4001 = shalt.err (!%p3998_p1)
}
  0x3e   : > { %3667 = dma.hbm_to_vmem [thread:$0]  (!%p4228_p11), %s4806_s2, 128, %s4232_s6, [#allocation6]  }
  0x3f   : > { %s4002_s7 = scalar_lea.hbm %s4807_s3, 16384 }
  0x40   : > { %p4003_p6 = scmp.ne.s32.totalorder %s4807_s3, %s4002_s7  ;;  %p4009_p5 = scmp.lt.u32.totalorder %s4002_s7, %s4807_s3 }
  0x42   : > { %p4005_p10 = pnand %p4003_p6, %p4244_p13 }
  0x44   : > { %p4006_p3 = pneg %p4005_p10 }
  0x46   : > { %p4011_p7 = pnand %p4009_p5, %p4006_p3 }
  0x48   : > { %4014 = shalt.err (!%p4011_p7)
}
  0x49   : > { %s4015_s13 = scalar_lea.vmem %s201_s8, 16384  ;;  %p4023_p2 = scmp.lt.s32.totalorder %s201_s8, %s201_s8 }
  0x4a   : > { %p4016_p9 = scmp.ne.s32.totalorder %s201_s8, %s4015_s13  ;;  %p4024_p1 = scmp.lt.s32.totalorder %s4015_s13, %s4015_s13 }
  0x4c   : > { %p4018_p12 = pnand %p4016_p9, %p4244_p13  ;;  %p4025_p4 = por %p4024_p1, %p4023_p2 }
  0x4e   : > { %p4019_p0 = pneg %p4018_p12 }
  0x50   : > { %p4026_p8 = pnand %p4025_p4, %p4019_p0 }
  0x52   : > { %4029 = shalt.err (!%p4026_p8)
}
  0x53   : > { %s4141_s6 = smov 128   ;;  %s4142_s14 = smov 8  }
  0x54   : > { %3670 = dma.hbm_to_vmem [thread:$0]  (!%p4228_p11), %s4807_s3, 16384, %s201_s8, [#allocation9], %s4141_s6, %s4141_s6, %s4142_s14  }
  0x55   : > { %s4311_s28 = sadd.s32 1, %s4134_s21   ;;  %s30_s23 = sadd.s32 1, %s4130_s20 }
  0x56   : > { %s27_s17 = ssub.s32 %s4134_s21, %s4311_s28  ;;  %p37_p8 = scmp.ne.s32.totalorder %s4130_s20, %s4126_s19 }
  0x57   : > { %p28_p4 = scmp.eq.s32.totalorder %s27_s17, 0  ;;  %p38_p13 = scmp.eq.s32.totalorder %s4134_s21, 0 }
  0x58   : > { %p3682_p6 = scmp.lt.s32.totalorder %s4134_s21, 2  ;;  %p4818_p3 = scmp.eq.s32.totalorder %s4198_s22, 1 }
  0x59   : > { %s4321_s27 = scalar_select %p28_p4, %s4130_s20, %s30_s23  }
  0x5a   : > { %p39_p10 = por %p38_p13, %p37_p8  ;;  %p4325_p5 = por %p4818_p3, %p37_p8 }
  0x5b   : > { %s217_s30 = sand.u32 1, %s4130_s20   ;;  %s3514_s7 = sshll.u32 %s4134_s21, 11 }
  0x5c   : > { %s3225_s8 = sshll.u32 %s217_s30, 7  ;;  %s4334_s11 = scalar_lea.hbm %s4804_s0, %s3514_s7 }
  0x5d   : > { %s221_s12 = scalar_lea.vmem [#allocation2], %s3225_s8  ;;  %p4336_p11 = pnand %p3682_p6, %p39_p10 }
  0x5e   : > { %s229_s13 = sshll.u32 %s221_s12, 4  ;;  %s4342_s16 = scalar_lea.sflag [#allocation3], %s217_s30  ;;  %s4340_s13 = int_to_ptr.vmem [resolvable:$true] %s229_s13 }
  0x5f   : > { %s4030_s17 = scalar_lea.hbm %s4334_s11, 2048  ;;  %p4032_p9 = pneg %p4336_p11 }
  0x60   : > { %p4031_p7 = scmp.ne.s32.totalorder %s4334_s11, %s4030_s17  ;;  %s4035_s8 = scalar_lea.hbm %s4804_s0, 4096 }
  0x61   : > { %p4036_p2 = scmp.lt.u32.totalorder %s4334_s11, %s4804_s0  ;;  %p4037_p1 = scmp.lt.u32.totalorder %s4035_s8, %s4030_s17 }
  0x62   : > { %p4033_p12 = pnand %p4032_p9, %p4031_p7  ;;  %p4039_p8 = scmp.lt.u32.totalorder %s4030_s17, %s4334_s11 }
  0x63   : > { %p4038_p4 = por %p4037_p1, %p4036_p2 }
  0x64   : > { %p4034_p0 = pneg %p4033_p12 }
  0x65   : > { %p4040_p13 = por %p4039_p8, %p4038_p4 }
  0x67   : > { %p4041_p6 = pnand %p4040_p13, %p4034_p0 }
  0x69   : > { %4044 = shalt.err (!%p4041_p6)
}
  0x6a   : > { %s4045_s30 = scalar_lea.vmem %s4340_s13, 2048  ;;  %s4143_s12 = smov [#allocation2]  }
  0x6b   : > { %p4046_p10 = scmp.ne.s32.totalorder %s4340_s13, %s4045_s30  ;;  %s4050_s23 = sshll.u32 %s4143_s12, 4  ;;  %s4051_s23 = int_to_ptr.vmem [resolvable:$false] %s4050_s23 }
  0x6c   : > { %s4052_s7 = scalar_lea.vmem %s4051_s23, 4096  ;;  %p4053_p12 = scmp.lt.s32.totalorder %s4340_s13, %s4051_s23 }
  0x6d   : > { %p4048_p3 = pnand %p4046_p10, %p4032_p9  ;;  %p4054_p2 = scmp.lt.s32.totalorder %s4052_s7, %s4045_s30 }
  0x6f   : > { %p4049_p7 = pneg %p4048_p3  ;;  %p4055_p1 = por %p4054_p2, %p4053_p12 }
  0x71   : > { %p4056_p4 = pnand %p4055_p1, %p4049_p7 }
  0x73   : > { %4059 = shalt.err (!%p4056_p4)
}
  0x74   : > { %3674 = dma.hbm_to_vmem [thread:$0]  (!%p4336_p11), %s4334_s11, 2048, %s4340_s13, %s4342_s16, %s4141_s6, %s4141_s6, %s4142_s14  }
  0x75   : > { %p4821_p9 = scmp.ne.s32.totalorder %s4815_s26, 0 }
  0x76   : > { %s4376_s17 = sand.u32 (!%p4821_p9), 1, %s4126_s19   ;;  %p4822_p0 = scmp.ne.s32.totalorder (!%p4821_p9), %s4813_s24, 0 }
  0x77   : > { %241 = sbr.rel (%p4821_p9) target bundleno = 904 (0x388), region = 40  ;;  %s3230_s8 = sshll.u32 (!%p4821_p9), %s4376_s17, 7 }
  0x78   : > { %s244_s9 = scalar_lea.sflag (!%p4821_p9), [#allocation3], %s4376_s17  ;;  %s4380_s10 = scalar_lea.vmem (!%p4821_p9), [#allocation2], %s3230_s8 }
  0x7e   : > { %4105 = dma.done.wait (%p4822_p0), %s244_s9, 2048  }
  0x7f   : > { %4107 = vsyncadd (%p4822_p0), %s244_s9, 4294965248  ;;  %p4823_p11 = scmp.eq.s32.totalorder %s4198_s22, 0 }
  0x81   : > { %4109 = dma.done.wait (%p4823_p11), [#allocation6], 16512   ;;  %p4824_p8 = pmov %p4823_p11 }
  0x83   : > { %4111 = vsyncadd (%p4824_p8), [#allocation6], 4294950784  ;;  %p4825_p13 = pmov %p4824_p8 }
  0x84   : > { %p4826_p6 = pmov %p4824_p8 }
  0x85   : > { %4113 = dma.done.wait (%p4825_p13), [#allocation9], 16384  }
  0x86   : > { %4115 = vsyncadd (%p4826_p6), [#allocation9], 4294950912  ;;  %v304_v0 = vld [vmem:[#allocation5] sm:$0xff]  ;;  %v305_v63 = vld [vmem:[#allocation5 + $0x8] sm:$0xff]  ;;  %s3234_s6 = sshll.u32 %s4376_s17, 8  ;;  %s3516_s11 = sshll.u32 %s4198_s22, 12 }
  0x87   : > { %v308_v1 = vld [vmem:[#allocation5 + $0x20] sm:$0xff]  ;;  %s4689_s14 = scalar_lea.vmem [#allocation10], %s3234_s6  ;;  %s4754_s30 = scalar_lea.hbm %s4809_s5, %s3516_s11 }
  0x88   : > { %v312_v2 = vld [vmem:[#allocation5 + $0x40] sm:$0xff]  ;;  %v3252_v3 = vcombine.high %v304_v0, %v308_v1  ;;  %v3251_v4 = vcombine.low %v304_v0, %v308_v1  ;;  %v309_v0 = vld [vmem:[#allocation5 + $0x28] sm:$0xff]  ;;  %s3117_s13 = sshll.u32 %s4689_s14, 4  ;;  %s3103_s22 = scalar_lea.sflag [#allocation4], %s4376_s17  ;;  %s4756_s13 = int_to_ptr.vmem [resolvable:$true] %s3117_s13 }
  0x89   : > { %v316_v5 = vld [vmem:[#allocation5 + $0x60] sm:$0xff]  ;;  %s4060_s12 = scalar_lea.vmem %s4756_s13, 4096  ;;  %s4144_s23 = smov [#allocation10]  }
  0x8a   : > { %v3260_v6 = vcombine.high %v312_v2, %v316_v5  ;;  %v320_v7 = vld [vmem:[#allocation5 + $0x80] sm:$0xff]  ;;  %1194 = vmatprep.subr.bf16.mxu1 %v3252_v3  ;;  %v3259_v9 = vcombine.low %v312_v2, %v316_v5  ;;  %v313_v3 = vld [vmem:[#allocation5 + $0x48] sm:$0xff]  ;;  %p4061_p10 = scmp.ne.s32.totalorder %s4756_s13, %s4060_s12  ;;  %s4064_s7 = sshll.u32 %s4144_s23, 4  ;;  %s4065_s7 = int_to_ptr.vmem [resolvable:$false] %s4064_s7 }
  0x8b   : > { %v324_v8 = vld [vmem:[#allocation5 + $0xa0] sm:$0xff]  ;;  %1195 = vmatpush1.bf16.msra.mxu1 %v3251_v4  ;;  %v317_v4 = vld [vmem:[#allocation5 + $0x68] sm:$0xff]  ;;  %s4066_s8 = scalar_lea.vmem %s4065_s7, 8192  ;;  %p4067_p12 = scmp.lt.s32.totalorder %s4756_s13, %s4065_s7 }
  0x8c   : > { %1196 = vmatprep.subr.bf16.mxu1 %v3260_v6  ;;  %v3268_v10 = vcombine.high %v320_v7, %v324_v8  ;;  %v328_v11 = vld [vmem:[#allocation5 + $0xc0] sm:$0xff]  ;;  %v3267_v13 = vcombine.low %v320_v7, %v324_v8  ;;  %v3254_v6 = vcombine.high %v305_v63, %v309_v0  ;;  %v4402_v7 = vld [vmem:[%s4380_s10 + $0x14] ss:$8 sps:$4 sm:$0xff]   ;;  %v3253_v8 = vcombine.low %v305_v63, %v309_v0  ;;  %p4062_p3 = pnand %p4061_p10, %p4325_p5  ;;  %p4068_p2 = scmp.lt.s32.totalorder %s4066_s8, %s4060_s12 }
  0x8d   : > { %v332_v12 = vld [vmem:[#allocation5 + $0xe0] sm:$0xff] }
  0x8e   : > { %v3276_v14 = vcombine.high %v328_v11, %v332_v12  ;;  %v336_v15 = vld [vmem:[#allocation5 + $0x100] sm:$0xff]  ;;  %v3275_v18 = vcombine.low %v328_v11, %v332_v12  ;;  %v3262_v11 = vcombine.high %v313_v3, %v317_v4  ;;  %v3261_v12 = vcombine.low %v313_v3, %v317_v4  ;;  %v401_v3 = vld [vmem:[#allocation5 + $0x308] sm:$0xff]  ;;  %p4063_p7 = pneg %p4062_p3  ;;  %p4069_p1 = por %p4068_p2, %p4067_p12 }
  0x8f   : > { %1197 = vmatpush1.bf16.msra.mxu1 %v3259_v9  ;;  %v340_v16 = vld [vmem:[#allocation5 + $0x120] sm:$0xff]  ;;  %v321_v9 = vld [vmem:[#allocation5 + $0x88] sm:$0xff] }
  0x90   : > { %1198 = vmatprep.subr.bf16.mxu1 %v3268_v10  ;;  %v4395_v17 = vld [vmem:[%s4380_s10 + $0x4] ss:$8 sps:$4 sm:$0xff]   ;;  %v3284_v19 = vcombine.high %v336_v15, %v340_v16  ;;  %v3283_v22 = vcombine.low %v336_v15, %v340_v16  ;;  %v4399_v5 = vld [vmem:[%s4380_s10] ss:$8 sps:$4 sm:$0xff]   ;;  %v4407_v15 = vld [vmem:[%s4380_s10 + $0x10] ss:$8 sps:$4 sm:$0xff]   ;;  %p4070_p4 = pnand %p4069_p1, %p4063_p7 }
  0x91   : > { %1226 = vmatprep.mubr.bf16.mxu1 %v4395_v17  ;;  %v344_v20 = vld [vmem:[#allocation5 + $0x140] sm:$0xff]  ;;  %v325_v10 = vld [vmem:[#allocation5 + $0xa8] sm:$0xff] }
  0x92   : > { %v348_v21 = vld [vmem:[#allocation5 + $0x160] sm:$0xff]  ;;  %v3270_v16 = vcombine.high %v321_v9, %v325_v10  ;;  %v405_v4 = vld [vmem:[#allocation5 + $0x328] sm:$0xff] }
  0x93   : > { %1199 = vmatpush1.bf16.msra.mxu1 %v3267_v13  ;;  %v3292_v23 = vcombine.high %v344_v20, %v348_v21  ;;  %v352_v24 = vld [vmem:[#allocation5 + $0x180] sm:$0xff]  ;;  %v3291_v26 = vcombine.low %v344_v20, %v348_v21  ;;  %v329_v13 = vld [vmem:[#allocation5 + $0xc8] sm:$0xff] }
  0x94   : > { %1200 = vmatprep.subr.bf16.mxu1 %v3276_v14  ;;  %v356_v25 = vld [vmem:[#allocation5 + $0x1a0] sm:$0xff]  ;;  %v333_v14 = vld [vmem:[#allocation5 + $0xe8] sm:$0xff] }
  0x95   : > { %v3300_v27 = vcombine.high %v352_v24, %v356_v25  ;;  %v360_v28 = vld [vmem:[#allocation5 + $0x1c0] sm:$0xff]  ;;  %v3299_v30 = vcombine.low %v352_v24, %v356_v25  ;;  %v337_v20 = vld [vmem:[#allocation5 + $0x108] sm:$0xff] }
  0x96   : > { %v364_v29 = vld [vmem:[#allocation5 + $0x1e0] sm:$0xff]  ;;  %v341_v21 = vld [vmem:[#allocation5 + $0x128] sm:$0xff] }
  0x97   : > { %1201 = vmatpush1.bf16.msra.mxu1 %v3275_v18  ;;  %v3308_v31 = vcombine.high %v360_v28, %v364_v29  ;;  %v368_v32 = vld [vmem:[#allocation5 + $0x200] sm:$0xff]  ;;  %v3307_v34 = vcombine.low %v360_v28, %v364_v29  ;;  %v345_v24 = vld [vmem:[#allocation5 + $0x148] sm:$0xff]  ;;  %v4418_v28 = vld [vmem:[%s4380_s10 + $0x34] ss:$8 sps:$4 sm:$0xff]   ;;  %v3285_v29 = vcombine.low %v337_v20, %v341_v21 }
  0x98   : > { %1202 = vmatprep.subr.bf16.mxu1 %v3284_v19  ;;  %v372_v33 = vld [vmem:[#allocation5 + $0x220] sm:$0xff]  ;;  %v3269_v19 = vcombine.low %v321_v9, %v325_v10  ;;  %v349_v25 = vld [vmem:[#allocation5 + $0x168] sm:$0xff]  ;;  %v3350_v10 = vcombine.high %v401_v3, %v405_v4 }
  0x99   : > { %v3316_v35 = vcombine.high %v368_v32, %v372_v33  ;;  %v376_v36 = vld [vmem:[#allocation5 + $0x240] sm:$0xff]  ;;  %v3315_v38 = vcombine.low %v368_v32, %v372_v33  ;;  %v3294_v32 = vcombine.high %v345_v24, %v349_v25  ;;  %v3293_v33 = vcombine.low %v345_v24, %v349_v25 }
  0x9a   : > { %v380_v37 = vld [vmem:[#allocation5 + $0x260] sm:$0xff] }
  0x9b   : > { %1203 = vmatpush1.bf16.msra.mxu1 %v3283_v22  ;;  %v3324_v39 = vcombine.high %v376_v36, %v380_v37  ;;  %v384_v40 = vld [vmem:[#allocation5 + $0x280] sm:$0xff]  ;;  %v3323_v42 = vcombine.low %v376_v36, %v380_v37  ;;  %v3278_v22 = vcombine.high %v329_v13, %v333_v14  ;;  %v4423_v36 = vld [vmem:[%s4380_s10 + $0x30] ss:$8 sps:$4 sm:$0xff]  }
  0x9c   : > { %1204 = vmatprep.subr.bf16.mxu1 %v3292_v23  ;;  %v388_v41 = vld [vmem:[#allocation5 + $0x2a0] sm:$0xff]  ;;  %v3277_v23 = vcombine.low %v329_v13, %v333_v14  ;;  %v3764_v14 = vld [vmem:[#allocation8 + $0x44] ss:$8 sps:$4 sm:$0xff]  }
  0x9d   : > { %v3332_v43 = vcombine.high %v384_v40, %v388_v41  ;;  %v392_v44 = vld [vmem:[#allocation5 + $0x2c0] sm:$0xff]  ;;  %v3331_v46 = vcombine.low %v384_v40, %v388_v41  ;;  %v369_v41 = vld [vmem:[#allocation5 + $0x208] sm:$0xff] }
  0x9e   : > { %v396_v45 = vld [vmem:[#allocation5 + $0x2e0] sm:$0xff] }
  0x9f   : > { %1205 = vmatpush1.bf16.msra.mxu1 %v3291_v26  ;;  %v400_v47 = vld [vmem:[#allocation5 + $0x300] sm:$0xff]  ;;  %v3340_v49 = vcombine.high %v392_v44, %v396_v45  ;;  %v3339_v50 = vcombine.low %v392_v44, %v396_v45  ;;  %v377_v45 = vld [vmem:[#allocation5 + $0x248] sm:$0xff] }
  0xa0   : > { %1206 = vmatprep.subr.bf16.mxu1 %v3300_v27  ;;  %v404_v48 = vld [vmem:[#allocation5 + $0x320] sm:$0xff]  ;;  %v3286_v27 = vcombine.high %v337_v20, %v341_v21  ;;  %v3766_v20 = vld [vmem:[#allocation8 + $0x40] ss:$8 sps:$4 sm:$0xff]  }
  0xa1   : > { %v408_v51 = vld [vmem:[#allocation5 + $0x340] sm:$0xff]  ;;  %v3348_v53 = vcombine.high %v400_v47, %v404_v48  ;;  %v3347_v54 = vcombine.low %v400_v47, %v404_v48  ;;  %v3752_v48 = vld [vmem:[#allocation8 + $0x4] ss:$8 sps:$4 sm:$0xff]  }
  0xa2   : > { %v412_v52 = vld [vmem:[#allocation5 + $0x360] sm:$0xff]  ;;  %2618 = vmatprep.subr.bf16.mxu0 %v3752_v48  ;;  %v3776_v48 = vld [vmem:[#allocation8 + $0x84] ss:$8 sps:$4 sm:$0xff]  }
  0xa3   : > { %1207 = vmatpush1.bf16.msra.mxu1 %v3299_v30  ;;  %v416_v55 = vld [vmem:[#allocation5 + $0x380] sm:$0xff]  ;;  %v3356_v57 = vcombine.high %v408_v51, %v412_v52  ;;  %v3355_v58 = vcombine.low %v408_v51, %v412_v52  ;;  %v353_v30 = vld [vmem:[#allocation5 + $0x188] sm:$0xff] }
  0xa4   : > { %1208 = vmatprep.subr.bf16.mxu1 %v3308_v31  ;;  %v420_v56 = vld [vmem:[#allocation5 + $0x3a0] sm:$0xff]  ;;  %v357_v31 = vld [vmem:[#allocation5 + $0x1a8] sm:$0xff] }
  0xa5   : > { %v424_v59 = vld [vmem:[#allocation5 + $0x3c0] sm:$0xff]  ;;  %v3364_v61 = vcombine.high %v416_v55, %v420_v56  ;;  %v3363_v62 = vcombine.low %v416_v55, %v420_v56  ;;  %v3302_v37 = vcombine.high %v353_v30, %v357_v31  ;;  %v3754_v51 = vld [vmem:[#allocation8] ss:$8 sps:$4 sm:$0xff]  }
  0xa6   : > { %v428_v60 = vld [vmem:[#allocation5 + $0x3e0] sm:$0xff]  ;;  %2619 = vmatpush1.bf16.msra.mxu0 %v3754_v51  ;;  %v3778_v51 = vld [vmem:[#allocation8 + $0x80] ss:$8 sps:$4 sm:$0xff]  }
  0xa7   : > { %1209 = vmatpush1.bf16.msra.mxu1 %v3307_v34  ;;  %v3372_v1 = vcombine.high %v424_v59, %v428_v60  ;;  %v3371_v2 = vcombine.low %v424_v59, %v428_v60  ;;  %v4410_v18 = vld [vmem:[%s4380_s10 + $0x24] ss:$8 sps:$4 sm:$0xff]   ;;  %v4415_v26 = vld [vmem:[%s4380_s10 + $0x20] ss:$8 sps:$4 sm:$0xff]  }
  0xa8   : > { %1210 = vmatprep.subr.bf16.mxu1 %v3316_v35  ;;  %v361_v34 = vld [vmem:[#allocation5 + $0x1c8] sm:$0xff]  ;;  %v3755_v55 = vld [vmem:[#allocation8 + $0x14] ss:$8 sps:$4 sm:$0xff]   ;;  %v3763_v9 = vld [vmem:[#allocation8 + $0x30] ss:$8 sps:$4 sm:$0xff]  }
  0xa9   : > { %v365_v35 = vld [vmem:[#allocation5 + $0x1e8] sm:$0xff]  ;;  %2620 = vmatprep.subr.bf16.mxu0 %v3755_v55  ;;  %v3767_v24 = vld [vmem:[#allocation8 + $0x54] ss:$8 sps:$4 sm:$0xff]   ;;  %v3781_v55 = vld [vmem:[#allocation8 + $0x90] ss:$8 sps:$4 sm:$0xff]  }
  0xaa   : > { %v3310_v40 = vcombine.high %v361_v34, %v365_v35  ;;  %v4431_v47 = vld [vmem:[%s4380_s10 + $0x40] ss:$8 sps:$4 sm:$0xff]   ;;  %v4442_v0 = vld [vmem:[%s4380_s10 + $0x64] ss:$8 sps:$4 sm:$0xff]  }
  0xab   : > { %1211 = vmatpush1.bf16.msra.mxu1 %v3315_v38  ;;  %v3301_v38 = vcombine.low %v353_v30, %v357_v31  ;;  %v393_v59 = vld [vmem:[#allocation5 + $0x2c8] sm:$0xff] }
  0xac   : > { %1212 = vmatprep.subr.bf16.mxu1 %v3324_v39  ;;  %v4426_v39 = vld [vmem:[%s4380_s10 + $0x44] ss:$8 sps:$4 sm:$0xff]   ;;  %v4447_v13 = vld [vmem:[%s4380_s10 + $0x60] ss:$8 sps:$4 sm:$0xff]  }
  0xad   : > { %v397_v60 = vld [vmem:[#allocation5 + $0x2e8] sm:$0xff] }
  0xae   : > { %v425_v30 = vld [vmem:[#allocation5 + $0x3c8] sm:$0xff] }
  0xaf   : > { %1213 = vmatpush1.bf16.msra.mxu1 %v3323_v42  ;;  %v373_v42 = vld [vmem:[#allocation5 + $0x228] sm:$0xff] }
  0xb0   : > { %1214 = vmatprep.subr.bf16.mxu1 %v3332_v43  ;;  %v3309_v43 = vcombine.low %v361_v34, %v365_v35  ;;  %v3318_v44 = vcombine.high %v369_v41, %v373_v42  ;;  %v429_v31 = vld [vmem:[#allocation5 + $0x3e8] sm:$0xff] }
  0xb1   : > { %v3772_v35 = vld [vmem:[#allocation8 + $0x60] ss:$8 sps:$4 sm:$0xff]  }
  0xb3   : > { %1215 = vmatpush1.bf16.msra.mxu1 %v3331_v46  ;;  %v381_v46 = vld [vmem:[#allocation5 + $0x268] sm:$0xff] }
  0xb4   : > { %1216 = vmatprep.subr.bf16.mxu1 %v3340_v49  ;;  %v3317_v49 = vcombine.low %v369_v41, %v373_v42  ;;  %v3326_v52 = vcombine.high %v377_v45, %v381_v46  ;;  %v3325_v56 = vcombine.low %v377_v45, %v381_v46  ;;  %v3773_v41 = vld [vmem:[#allocation8 + $0x74] ss:$8 sps:$4 sm:$0xff]   ;;  %v3373_v42 = vcombine.low %v425_v30, %v429_v31  ;;  %v314_v45 = vld [vmem:[#allocation5 + $0x50] sm:$0xff] }
  0xb5   : > { %v318_v46 = vld [vmem:[#allocation5 + $0x70] sm:$0xff] }
  0xb7   : > { %1217 = vmatpush1.bf16.msra.mxu1 %v3339_v50  ;;  %v4434_v50 = vld [vmem:[%s4380_s10 + $0x54] ss:$8 sps:$4 sm:$0xff]  }
  0xb8   : > { %1218 = vmatprep.subr.bf16.mxu1 %v3348_v53  ;;  %v385_v53 = vld [vmem:[#allocation5 + $0x288] sm:$0xff] }
  0xbb   : > { %1219 = vmatpush1.bf16.msra.mxu1 %v3347_v54  ;;  %v389_v54 = vld [vmem:[#allocation5 + $0x2a8] sm:$0xff] }
  0xbc   : > { %1220 = vmatprep.subr.bf16.mxu1 %v3356_v57  ;;  %v3757_v57 = vld [vmem:[#allocation8 + $0x10] ss:$8 sps:$4 sm:$0xff]   ;;  %v3333_v63 = vcombine.low %v385_v53, %v389_v54 }
  0xbd   : > { %2621 = vmatpush1.bf16.msra.mxu0 %v3757_v57  ;;  %v3263_v57 = vcombine.low %v314_v45, %v318_v46 }
  0xbf   : > { %1221 = vmatpush1.bf16.msra.mxu1 %v3355_v58  ;;  %v3334_v58 = vcombine.high %v385_v53, %v389_v54  ;;  %v322_v53 = vld [vmem:[#allocation5 + $0x90] sm:$0xff] }
  0xc0   : > { %1222 = vmatprep.subr.bf16.mxu1 %v3364_v61  ;;  %v4439_v61 = vld [vmem:[%s4380_s10 + $0x50] ss:$8 sps:$4 sm:$0xff]  }
  0xc1   : > { %v326_v54 = vld [vmem:[#allocation5 + $0xb0] sm:$0xff] }
  0xc3   : > { %1223 = vmatpush1.bf16.msra.mxu1 %v3363_v62  ;;  %v3758_v62 = vld [vmem:[#allocation8 + $0x24] ss:$8 sps:$4 sm:$0xff]  }
  0xc4   : > { %1224 = vmatprep.subr.bf16.mxu1 %v3372_v1  ;;  %v3760_v1 = vld [vmem:[#allocation8 + $0x20] ss:$8 sps:$4 sm:$0xff]   ;;  %2622 = vmatprep.subr.bf16.mxu0 %v3758_v62 }
  0xc5   : > { %2623 = vmatpush1.bf16.msra.mxu0 %v3760_v1  ;;  %v3784_v62 = vld [vmem:[#allocation8 + $0xa0] ss:$8 sps:$4 sm:$0xff]  }
  0xc7   : > { %1225 = vmatpush1.bf16.msra.mxu1 %v3371_v2  ;;  %v3342_v2 = vcombine.high %v393_v59, %v397_v60 }
  0xc8   : > { %1307 = vmatprep.subr.bf16.mxu1 %v3254_v6  ;;  %v3761_v6 = vld [vmem:[#allocation8 + $0x34] ss:$8 sps:$4 sm:$0xff]  }
  0xc9   : > { %2624 = vmatprep.subr.bf16.mxu0 %v3761_v6  ;;  %v3787_v6 = vld [vmem:[#allocation8 + $0xb0] ss:$8 sps:$4 sm:$0xff]  }
  0xca   : > { %1227 = vmatmul.mubr.bf16.vlgmr.msra.gmra.mrb[0].mxu1 %v4399_v5  ;;  %2625 = vmatpush1.bf16.msra.mxu0 %v3763_v9 }
  0xcb   : > { %1308 = vmatpush1.bf16.msra.mxu1 %v3253_v8  ;;  %1236 = vmatprep.mubr.bf16.mxu1 %v4402_v7  ;;  %v3341_v8 = vcombine.low %v393_v59, %v397_v60  ;;  %v330_v59 = vld [vmem:[#allocation5 + $0xd0] sm:$0xff] }
  0xcc   : > { %1309 = vmatprep.subr.bf16.mxu1 %v3262_v11  ;;  %v409_v11 = vld [vmem:[#allocation5 + $0x348] sm:$0xff]  ;;  %2626 = vmatprep.subr.bf16.mxu0 %v3764_v14  ;;  %v334_v60 = vld [vmem:[#allocation5 + $0xf0] sm:$0xff] }
  0xcd   : > { %v3280_v1 = vcombine.high %v330_v59, %v334_v60  ;;  %v3279_v9 = vcombine.low %v330_v59, %v334_v60  ;;  %v3790_v14 = vld [vmem:[#allocation8 + $0xc0] ss:$8 sps:$4 sm:$0xff]  }
  0xce   : > { %2627 = vmatpush1.bf16.msra.mxu0 %v3766_v20  ;;  %v406_v59 = vld [vmem:[#allocation5 + $0x330] sm:$0xff] }
  0xcf   : > { %1310 = vmatpush1.bf16.msra.mxu1 %v3261_v12  ;;  %v413_v12 = vld [vmem:[#allocation5 + $0x368] sm:$0xff]  ;;  %2628 = vmatprep.subr.bf16.mxu0 %v3767_v24 }
  0xd0   : > { %1311 = vmatprep.subr.bf16.mxu1 %v3270_v16  ;;  %v3349_v16 = vcombine.low %v401_v3, %v405_v4  ;;  %v3358_v21 = vcombine.high %v409_v11, %v413_v12  ;;  %v3357_v25 = vcombine.low %v409_v11, %v413_v12  ;;  %v342_v3 = vld [vmem:[#allocation5 + $0x130] sm:$0xff]  ;;  %v3785_v4 = vld [vmem:[#allocation8 + $0xb4] ss:$8 sps:$4 sm:$0xff]  }
  0xd1   : > { %v346_v11 = vld [vmem:[#allocation5 + $0x150] sm:$0xff] }
  0xd2   : > { %1237 = vmatmul.mubr.bf16.gmra.mrb[4].mxu1 %v4407_v15  ;;  %v350_v12 = vld [vmem:[#allocation5 + $0x170] sm:$0xff] }
  0xd3   : > { %1312 = vmatpush1.bf16.msra.mxu1 %v3269_v19  ;;  %1246 = vmatprep.mubr.bf16.mxu1 %v4410_v18  ;;  %v4450_v19 = vld [vmem:[%s4380_s10 + $0x74] ss:$8 sps:$4 sm:$0xff]   ;;  %v3296_v20 = vcombine.high %v346_v11, %v350_v12  ;;  %v3295_v24 = vcombine.low %v346_v11, %v350_v12 }
  0xd4   : > { %1313 = vmatprep.subr.bf16.mxu1 %v3278_v22  ;;  %v417_v22 = vld [vmem:[#allocation5 + $0x388] sm:$0xff]  ;;  %v430_v11 = vld [vmem:[#allocation5 + $0x3f0] sm:$0xff] }
  0xd7   : > { %1314 = vmatpush1.bf16.msra.mxu1 %v3277_v23  ;;  %v421_v23 = vld [vmem:[#allocation5 + $0x3a8] sm:$0xff] }
  0xd8   : > { %1315 = vmatprep.subr.bf16.mxu1 %v3286_v27  ;;  %v3769_v27 = vld [vmem:[#allocation8 + $0x50] ss:$8 sps:$4 sm:$0xff]   ;;  %v3365_v34 = vcombine.low %v417_v22, %v421_v23 }
  0xd9   : > { %2629 = vmatpush1.bf16.msra.mxu0 %v3769_v27 }
  0xda   : > { %1247 = vmatmul.mubr.bf16.gmra.mrb[8].mxu1 %v4415_v26 }
  0xdb   : > { %1316 = vmatpush1.bf16.msra.mxu1 %v3285_v29  ;;  %1256 = vmatprep.mubr.bf16.mxu1 %v4418_v28  ;;  %v3366_v29 = vcombine.high %v417_v22, %v421_v23  ;;  %v358_v22 = vld [vmem:[#allocation5 + $0x1b0] sm:$0xff]  ;;  %v3791_v23 = vld [vmem:[#allocation8 + $0xd4] ss:$8 sps:$4 sm:$0xff]  }
  0xdc   : > { %1317 = vmatprep.subr.bf16.mxu1 %v3294_v32  ;;  %v4455_v32 = vld [vmem:[%s4380_s10 + $0x70] ss:$8 sps:$4 sm:$0xff]  }
  0xdf   : > { %1318 = vmatpush1.bf16.msra.mxu1 %v3293_v33  ;;  %v3770_v33 = vld [vmem:[#allocation8 + $0x64] ss:$8 sps:$4 sm:$0xff]  }
  0xe0   : > { %1319 = vmatprep.subr.bf16.mxu1 %v3302_v37  ;;  %v3374_v37 = vcombine.high %v425_v30, %v429_v31  ;;  %2630 = vmatprep.subr.bf16.mxu0 %v3770_v33  ;;  %v366_v30 = vld [vmem:[#allocation5 + $0x1f0] sm:$0xff] }
  0xe1   : > { %2631 = vmatpush1.bf16.msra.mxu0 %v3772_v35  ;;  %v3794_v31 = vld [vmem:[#allocation8 + $0xe4] ss:$8 sps:$4 sm:$0xff]  }
  0xe2   : > { %1257 = vmatmul.mubr.bf16.gmra.mrb[12].mxu1 %v4423_v36  ;;  %2632 = vmatprep.subr.bf16.mxu0 %v3773_v41 }
  0xe3   : > { %1320 = vmatpush1.bf16.msra.mxu1 %v3301_v38  ;;  %1266 = vmatprep.mubr.bf16.mxu1 %v4426_v39  ;;  %v306_v38 = vld [vmem:[#allocation5 + $0x10] sm:$0xff] }
  0xe4   : > { %1321 = vmatprep.subr.bf16.mxu1 %v3310_v40  ;;  %v310_v40 = vld [vmem:[#allocation5 + $0x30] sm:$0xff] }
  0xe7   : > { %1322 = vmatpush1.bf16.msra.mxu1 %v3309_v43  ;;  %v3775_v43 = vld [vmem:[#allocation8 + $0x70] ss:$8 sps:$4 sm:$0xff]  }
  0xe8   : > { %1323 = vmatprep.subr.bf16.mxu1 %v3318_v44  ;;  %v3256_v44 = vcombine.high %v306_v38, %v310_v40  ;;  %2633 = vmatpush1.bf16.msra.mxu0 %v3775_v43 }
  0xe9   : > { %2634 = vmatprep.subr.bf16.mxu0 %v3776_v48 }
  0xea   : > { %1267 = vmatmul.mubr.bf16.gmra.mrb[16].mxu1 %v4431_v47 }
  0xeb   : > { %1324 = vmatpush1.bf16.msra.mxu1 %v3317_v49  ;;  %1276 = vmatprep.mubr.bf16.mxu1 %v4434_v50  ;;  %v3255_v49 = vcombine.low %v306_v38, %v310_v40  ;;  %v374_v38 = vld [vmem:[#allocation5 + $0x230] sm:$0xff]  ;;  %v3797_v40 = vld [vmem:[#allocation8 + $0xf4] ss:$8 sps:$4 sm:$0xff]  }
  0xec   : > { %1325 = vmatprep.subr.bf16.mxu1 %v3326_v52  ;;  %v3264_v52 = vcombine.high %v314_v45, %v318_v46  ;;  %2635 = vmatpush1.bf16.msra.mxu0 %v3778_v51  ;;  %v382_v45 = vld [vmem:[#allocation5 + $0x270] sm:$0xff] }
  0xed   : > { %v3802_v46 = vld [vmem:[#allocation8 + $0x104] ss:$8 sps:$4 sm:$0xff]  }
  0xee   : > { %v386_v51 = vld [vmem:[#allocation5 + $0x290] sm:$0xff] }
  0xef   : > { %1326 = vmatpush1.bf16.msra.mxu1 %v3325_v56  ;;  %v3782_v56 = vld [vmem:[#allocation8 + $0xa4] ss:$8 sps:$4 sm:$0xff]  }
  0xf0   : > { %1327 = vmatprep.subr.bf16.mxu1 %v3334_v58  ;;  %v3272_v58 = vcombine.high %v322_v53, %v326_v54 }
  0xf2   : > { %1277 = vmatmul.mubr.bf16.gmra.mrb[20].mxu1 %v4439_v61 }
  0xf3   : > { %1328 = vmatpush1.bf16.msra.mxu1 %v3333_v63  ;;  %1286 = vmatprep.mubr.bf16.mxu1 %v4442_v0  ;;  %v3271_v63 = vcombine.low %v322_v53, %v326_v54 }
  0xf4   : > { %1329 = vmatprep.subr.bf16.mxu1 %v3342_v2  ;;  %v338_v2 = vld [vmem:[#allocation5 + $0x110] sm:$0xff] }
  0xf7   : > { %1330 = vmatpush1.bf16.msra.mxu1 %v3341_v8  ;;  %v3788_v8 = vld [vmem:[#allocation8 + $0xc4] ss:$8 sps:$4 sm:$0xff]  }
  0xf8   : > { %1331 = vmatprep.subr.bf16.mxu1 %v3350_v10  ;;  %v3288_v10 = vcombine.high %v338_v2, %v342_v3 }
  0xfa   : > { %1287 = vmatmul.mubr.bf16.gmra.mrb[24].mxu1 %v4447_v13 }
  0xfb   : > { %1332 = vmatpush1.bf16.msra.mxu1 %v3349_v16  ;;  %1296 = vmatprep.mubr.bf16.mxu1 %v4450_v19  ;;  %v3287_v16 = vcombine.low %v338_v2, %v342_v3 }
  0xfc   : > { %1333 = vmatprep.subr.bf16.mxu1 %v3358_v21  ;;  %v354_v21 = vld [vmem:[#allocation5 + $0x190] sm:$0xff] }
  0xfd   : > { %v3304_v27 = vcombine.high %v354_v21, %v358_v22  ;;  %v3303_v33 = vcombine.low %v354_v21, %v358_v22  ;;  %v4475_v22 = vld [vmem:[%s4380_s10 + $0x4] ss:$8 sps:$4 sm:$0xff]  }
  0xff   : > { %1334 = vmatpush1.bf16.msra.mxu1 %v3357_v25  ;;  %v3793_v25 = vld [vmem:[#allocation8 + $0xd0] ss:$8 sps:$4 sm:$0xff]  }
 0x100   : > { %1335 = vmatprep.subr.bf16.mxu1 %v3366_v29  ;;  %v362_v29 = vld [vmem:[#allocation5 + $0x1d0] sm:$0xff] }
 0x101   : > { %v3312_v35 = vcombine.high %v362_v29, %v366_v30  ;;  %v3311_v41 = vcombine.low %v362_v29, %v366_v30  ;;  %v323_v30 = vld [vmem:[#allocation5 + $0x98] sm:$0xff] }
 0x102   : > { %1297 = vmatmul.mubr.bf16.gmra.mrb[28].mxu1 %v4455_v32 }
 0x103   : > { %1336 = vmatpush1.bf16.msra.mxu1 %v3365_v34  ;;  %1339 = vmatprep.mubr.bf16.mxu1 %v4395_v17  ;;  %v3779_v17 = vld [vmem:[#allocation8 + $0x94] ss:$8 sps:$4 sm:$0xff]   ;;  %v3796_v34 = vld [vmem:[#allocation8 + $0xe0] ss:$8 sps:$4 sm:$0xff]  }
 0x104   : > { %1337 = vmatprep.subr.bf16.mxu1 %v3374_v37  ;;  %2636 = vmatprep.subr.bf16.mxu0 %v3779_v17  ;;  %v370_v37 = vld [vmem:[#allocation5 + $0x210] sm:$0xff] }
 0x105   : > { %2637 = vmatpush1.bf16.msra.mxu0 %v3781_v55  ;;  %v3320_v43 = vcombine.high %v370_v37, %v374_v38  ;;  %v3319_v48 = vcombine.low %v370_v37, %v374_v38  ;;  %v394_v17 = vld [vmem:[#allocation5 + $0x2d0] sm:$0xff]  ;;  %v335_v37 = vld [vmem:[#allocation5 + $0xf8] sm:$0xff] }
 0x106   : > { %2638 = vmatprep.subr.bf16.mxu0 %v3782_v56  ;;  %v398_v55 = vld [vmem:[#allocation5 + $0x2f0] sm:$0xff] }
 0x107   : > { %1338 = vmatpush1.bf16.msra.mxu1 %v3373_v42  ;;  %v3799_v42 = vld [vmem:[#allocation8 + $0xf0] ss:$8 sps:$4 sm:$0xff]   ;;  %v3343_v60 = vcombine.low %v394_v17, %v398_v55 }
 0x108   : > { %1420 = vmatprep.subr.bf16.mxu1 %v3256_v44  ;;  %v378_v44 = vld [vmem:[#allocation5 + $0x250] sm:$0xff] }
 0x109   : > { %2639 = vmatpush1.bf16.msra.mxu0 %v3784_v62  ;;  %v3327_v53 = vcombine.low %v378_v44, %v382_v45 }
 0x10a   : > { %1340 = vmatmul.mubr.bf16.vlgmr.msra.gmra.mrb[32].mxu1 %v4399_v5  ;;  %2640 = vmatprep.subr.bf16.mxu0 %v3785_v4  ;;  %v418_v4 = vld [vmem:[#allocation5 + $0x390] sm:$0xff] }
 0x10b   : > { %1421 = vmatpush1.bf16.msra.mxu1 %v3255_v49  ;;  %1349 = vmatprep.mubr.bf16.mxu1 %v4402_v7  ;;  %v3328_v49 = vcombine.high %v378_v44, %v382_v45  ;;  %v347_v45 = vld [vmem:[#allocation5 + $0x158] sm:$0xff] }
 0x10c   : > { %1422 = vmatprep.subr.bf16.mxu1 %v3264_v52  ;;  %v390_v52 = vld [vmem:[#allocation5 + $0x2b0] sm:$0xff] }
 0x10d   : > { %2641 = vmatpush1.bf16.msra.mxu0 %v3787_v6  ;;  %v3336_v54 = vcombine.high %v386_v51, %v390_v52  ;;  %v3335_v56 = vcombine.low %v386_v51, %v390_v52  ;;  %v422_v6 = vld [vmem:[#allocation5 + $0x3b0] sm:$0xff]  ;;  %v355_v51 = vld [vmem:[#allocation5 + $0x198] sm:$0xff] }
 0x10e   : > { %2642 = vmatprep.subr.bf16.mxu0 %v3788_v8  ;;  %v3367_v12 = vcombine.low %v418_v4, %v422_v6  ;;  %v359_v52 = vld [vmem:[#allocation5 + $0x1b8] sm:$0xff] }
 0x10f   : > { %1423 = vmatpush1.bf16.msra.mxu1 %v3263_v57  ;;  %v3344_v57 = vcombine.high %v394_v17, %v398_v55  ;;  %v363_v17 = vld [vmem:[#allocation5 + $0x1d8] sm:$0xff] }
 0x110   : > { %1424 = vmatprep.subr.bf16.mxu1 %v3272_v58  ;;  %v402_v58 = vld [vmem:[#allocation5 + $0x310] sm:$0xff]  ;;  %v367_v55 = vld [vmem:[#allocation5 + $0x1f8] sm:$0xff] }
 0x111   : > { %2643 = vmatpush1.bf16.msra.mxu0 %v3790_v14  ;;  %v3352_v62 = vcombine.high %v402_v58, %v406_v59  ;;  %v3351_v2 = vcombine.low %v402_v58, %v406_v59  ;;  %v371_v58 = vld [vmem:[#allocation5 + $0x218] sm:$0xff] }
 0x112   : > { %1350 = vmatmul.mubr.bf16.gmra.mrb[36].mxu1 %v4407_v15  ;;  %2644 = vmatprep.subr.bf16.mxu0 %v3791_v23  ;;  %v375_v59 = vld [vmem:[#allocation5 + $0x238] sm:$0xff] }
 0x113   : > { %1425 = vmatpush1.bf16.msra.mxu1 %v3271_v63  ;;  %1359 = vmatprep.mubr.bf16.mxu1 %v4410_v18  ;;  %v410_v63 = vld [vmem:[#allocation5 + $0x350] sm:$0xff] }
 0x114   : > { %1426 = vmatprep.subr.bf16.mxu1 %v3280_v1  ;;  %v414_v1 = vld [vmem:[#allocation5 + $0x370] sm:$0xff] }
 0x115   : > { %2645 = vmatpush1.bf16.msra.mxu0 %v3793_v25  ;;  %v3360_v3 = vcombine.high %v410_v63, %v414_v1  ;;  %v3359_v8 = vcombine.low %v410_v63, %v414_v1  ;;  %v319_v25 = vld [vmem:[#allocation5 + $0x78] sm:$0xff] }
 0x116   : > { %2646 = vmatprep.subr.bf16.mxu0 %v3794_v31  ;;  %v327_v31 = vld [vmem:[#allocation5 + $0xb8] sm:$0xff] }
 0x117   : > { %1427 = vmatpush1.bf16.msra.mxu1 %v3279_v9  ;;  %v3368_v9 = vcombine.high %v418_v4, %v422_v6  ;;  %v3273_v38 = vcombine.low %v323_v30, %v327_v31  ;;  %v379_v63 = vld [vmem:[#allocation5 + $0x258] sm:$0xff] }
 0x118   : > { %1428 = vmatprep.subr.bf16.mxu1 %v3288_v10  ;;  %v426_v10 = vld [vmem:[#allocation5 + $0x3d0] sm:$0xff]  ;;  %v383_v1 = vld [vmem:[#allocation5 + $0x278] sm:$0xff] }
 0x119   : > { %2647 = vmatpush1.bf16.msra.mxu0 %v3796_v34  ;;  %v3376_v14 = vcombine.high %v426_v10, %v430_v11  ;;  %v3375_v21 = vcombine.low %v426_v10, %v430_v11  ;;  %v3274_v34 = vcombine.high %v323_v30, %v327_v31  ;;  %v387_v4 = vld [vmem:[#allocation5 + $0x298] sm:$0xff] }
 0x11a   : > { %1360 = vmatmul.mubr.bf16.gmra.mrb[40].mxu1 %v4415_v26  ;;  %2648 = vmatprep.subr.bf16.mxu0 %v3797_v40  ;;  %v391_v6 = vld [vmem:[#allocation5 + $0x2b8] sm:$0xff] }
 0x11b   : > { %1429 = vmatpush1.bf16.msra.mxu1 %v3287_v16  ;;  %1369 = vmatprep.mubr.bf16.mxu1 %v4418_v28  ;;  %v307_v16 = vld [vmem:[#allocation5 + $0x18] sm:$0xff] }
 0x11c   : > { %1430 = vmatprep.subr.bf16.mxu1 %v3296_v20  ;;  %v311_v20 = vld [vmem:[#allocation5 + $0x38] sm:$0xff] }
 0x11d   : > { %2649 = vmatpush1.bf16.msra.mxu0 %v3799_v42  ;;  %v3258_v23 = vcombine.high %v307_v16, %v311_v20  ;;  %v343_v42 = vld [vmem:[#allocation5 + $0x138] sm:$0xff] }
 0x11e   : > { %2731 = vmatprep.subr.bf16.mxu0 %v3802_v46  ;;  %v351_v46 = vld [vmem:[#allocation5 + $0x178] sm:$0xff] }
 0x11f   : > { %1431 = vmatpush1.bf16.msra.mxu1 %v3295_v24  ;;  %v315_v24 = vld [vmem:[#allocation5 + $0x58] sm:$0xff] }
 0x120   : > { %1432 = vmatprep.subr.bf16.mxu1 %v3304_v27  ;;  %v3257_v27 = vcombine.low %v307_v16, %v311_v20  ;;  %v3266_v29 = vcombine.high %v315_v24, %v319_v25  ;;  %v395_v10 = vld [vmem:[#allocation5 + $0x2d8] sm:$0xff] }
 0x121   : > { %v399_v11 = vld [vmem:[#allocation5 + $0x2f8] sm:$0xff] }
 0x122   : > { %1370 = vmatmul.mubr.bf16.gmra.mrb[44].mxu1 %v4423_v36  ;;  %v403_v16 = vld [vmem:[#allocation5 + $0x318] sm:$0xff] }
 0x123   : > { %1433 = vmatpush1.bf16.msra.mxu1 %v3303_v33  ;;  %1379 = vmatprep.mubr.bf16.mxu1 %v4426_v39  ;;  %v3265_v33 = vcombine.low %v315_v24, %v319_v25  ;;  %v407_v20 = vld [vmem:[#allocation5 + $0x338] sm:$0xff] }
 0x124   : > { %1434 = vmatprep.subr.bf16.mxu1 %v3312_v35  ;;  %v331_v35 = vld [vmem:[#allocation5 + $0xd8] sm:$0xff] }
 0x125   : > { %v3282_v40 = vcombine.high %v331_v35, %v335_v37  ;;  %v411_v24 = vld [vmem:[#allocation5 + $0x358] sm:$0xff] }
 0x126   : > { %v415_v25 = vld [vmem:[#allocation5 + $0x378] sm:$0xff] }
 0x127   : > { %1435 = vmatpush1.bf16.msra.mxu1 %v3311_v41  ;;  %v339_v41 = vld [vmem:[#allocation5 + $0x118] sm:$0xff] }
 0x128   : > { %1436 = vmatprep.subr.bf16.mxu1 %v3320_v43  ;;  %v3281_v43 = vcombine.low %v331_v35, %v335_v37  ;;  %v3290_v44 = vcombine.high %v339_v41, %v343_v42  ;;  %v419_v30 = vld [vmem:[#allocation5 + $0x398] sm:$0xff] }
 0x129   : > { %v423_v31 = vld [vmem:[#allocation5 + $0x3b8] sm:$0xff] }
 0x12a   : > { %1380 = vmatmul.mubr.bf16.gmra.mrb[48].mxu1 %v4431_v47  ;;  %v427_v35 = vld [vmem:[#allocation5 + $0x3d8] sm:$0xff] }
 0x12b   : > { %1437 = vmatpush1.bf16.msra.mxu1 %v3319_v48  ;;  %1389 = vmatprep.mubr.bf16.mxu1 %v4434_v50  ;;  %v3289_v48 = vcombine.low %v339_v41, %v343_v42  ;;  %v431_v37 = vld [vmem:[#allocation5 + $0x3f8] sm:$0xff]  ;;  %v434_v42 = vlaneseq }
 0x12c   : > { %1438 = vmatprep.subr.bf16.mxu1 %v3328_v49  ;;  %v3298_v49 = vcombine.high %v347_v45, %v351_v46  ;;  %v3377_v41 = vcombine.low %v427_v35, %v431_v37 }
 0x12f   : > { %1439 = vmatpush1.bf16.msra.mxu1 %v3327_v53  ;;  %v3297_v53 = vcombine.low %v347_v45, %v351_v46  ;;  %v4501_v45 = vld [vmem:[#allocation7] sm:$0xff] }
 0x130   : > { %1440 = vmatprep.subr.bf16.mxu1 %v3336_v54  ;;  %v3306_v54 = vcombine.high %v355_v51, %v359_v52 }
 0x132   : > { %1390 = vmatmul.mubr.bf16.gmra.mrb[52].mxu1 %v4439_v61 }
 0x133   : > { %1441 = vmatpush1.bf16.msra.mxu1 %v3335_v56  ;;  %1399 = vmatprep.mubr.bf16.mxu1 %v4442_v0  ;;  %v3305_v56 = vcombine.low %v355_v51, %v359_v52 }
 0x134   : > { %1442 = vmatprep.subr.bf16.mxu1 %v3344_v57  ;;  %v3314_v57 = vcombine.high %v363_v17, %v367_v55 }
 0x137   : > { %1443 = vmatpush1.bf16.msra.mxu1 %v3343_v60  ;;  %v3313_v60 = vcombine.low %v363_v17, %v367_v55 }
 0x138   : > { %1444 = vmatprep.subr.bf16.mxu1 %v3352_v62  ;;  %v3322_v62 = vcombine.high %v371_v58, %v375_v59 }
 0x13a   : > { %1400 = vmatmul.mubr.bf16.gmra.mrb[56].mxu1 %v4447_v13 }
 0x13b   : > { %1445 = vmatpush1.bf16.msra.mxu1 %v3351_v2  ;;  %1409 = vmatprep.mubr.bf16.mxu1 %v4450_v19  ;;  %v3321_v2 = vcombine.low %v371_v58, %v375_v59  ;;  %v3800_v58 = vld [vmem:[#allocation8 + $0x100] ss:$8 sps:$4 sm:$0xff]  }
 0x13c   : > { %1446 = vmatprep.subr.bf16.mxu1 %v3360_v3  ;;  %v3330_v3 = vcombine.high %v379_v63, %v383_v1 }
 0x13f   : > { %1447 = vmatpush1.bf16.msra.mxu1 %v3359_v8  ;;  %v3329_v8 = vcombine.low %v379_v63, %v383_v1 }
 0x140   : > { %1448 = vmatprep.subr.bf16.mxu1 %v3368_v9  ;;  %v3338_v9 = vcombine.high %v387_v4, %v391_v6 }
 0x142   : > { %1410 = vmatmul.mubr.bf16.gmra.mrb[60].mxu1 %v4455_v32 }
 0x143   : > { %1449 = vmatpush1.bf16.msra.mxu1 %v3367_v12  ;;  %1452 = vmatprep.mubr.bf16.mxu1 %v4475_v22  ;;  %v3337_v12 = vcombine.low %v387_v4, %v391_v6 }
 0x144   : > { %1450 = vmatprep.subr.bf16.mxu1 %v3376_v14  ;;  %v3346_v14 = vcombine.high %v395_v10, %v399_v11 }
 0x147   : > { %1451 = vmatpush1.bf16.msra.mxu1 %v3375_v21  ;;  %v3345_v21 = vcombine.low %v395_v10, %v399_v11 }
 0x148   : > { %1533 = vmatprep.subr.bf16.mxu1 %v3258_v23  ;;  %v3354_v23 = vcombine.high %v403_v16, %v407_v20 }
 0x14a   : > { %1453 = vmatmul.mubr.bf16.vlgmr.msra.gmra.mrb[64].mxu1 %v4399_v5 }
 0x14b   : > { %1534 = vmatpush1.bf16.msra.mxu1 %v3257_v27  ;;  %1462 = vmatprep.mubr.bf16.mxu1 %v4402_v7  ;;  %v3353_v27 = vcombine.low %v403_v16, %v407_v20  ;;  %v3806_v16 = vld [vmem:[#allocation8 + $0x120] ss:$8 sps:$4 sm:$0xff]  }
 0x14c   : > { %1535 = vmatprep.subr.bf16.mxu1 %v3266_v29  ;;  %v3362_v29 = vcombine.high %v411_v24, %v415_v25 }
 0x14f   : > { %1536 = vmatpush1.bf16.msra.mxu1 %v3265_v33  ;;  %v3361_v33 = vcombine.low %v411_v24, %v415_v25 }
 0x150   : > { %1537 = vmatprep.subr.bf16.mxu1 %v3274_v34  ;;  %v3370_v34 = vcombine.high %v419_v30, %v423_v31 }
 0x152   : > { %1463 = vmatmul.mubr.bf16.gmra.mrb[68].mxu1 %v4407_v15 }
 0x153   : > { %1538 = vmatpush1.bf16.msra.mxu1 %v3273_v38  ;;  %1472 = vmatprep.mubr.bf16.mxu1 %v4410_v18  ;;  %v3369_v38 = vcombine.low %v419_v30, %v423_v31 }
 0x154   : > { %1539 = vmatprep.subr.bf16.mxu1 %v3282_v40  ;;  %v3378_v40 = vcombine.high %v427_v35, %v431_v37 }
 0x157   : > { %1540 = vmatpush1.bf16.msra.mxu1 %v3281_v43  ;;  %v4497_v43 = vshrl.u32 %v434_v42, 7 }
 0x158   : > { %1541 = vmatprep.subr.bf16.mxu1 %v3290_v44 }
 0x159   : > { %v436_v44 = vsub.s32 0, %v4497_v43  ;;  %v440_v46 = vsub.s32 1, %v4497_v43 }
 0x15a   : > { %1473 = vmatmul.mubr.bf16.gmra.mrb[72].mxu1 %v4415_v26 }
 0x15b   : > { %1542 = vmatpush1.bf16.msra.mxu1 %v3289_v48  ;;  %1482 = vmatprep.mubr.bf16.mxu1 %v4418_v28 }
 0x15c   : > { %1543 = vmatprep.subr.bf16.mxu1 %v3298_v49 }
 0x15f   : > { %1544 = vmatpush1.bf16.msra.mxu1 %v3297_v53 }
 0x160   : > { %1545 = vmatprep.subr.bf16.mxu1 %v3306_v54 }
 0x162   : > { %1483 = vmatmul.mubr.bf16.gmra.mrb[76].mxu1 %v4423_v36 }
 0x163   : > { %1546 = vmatpush1.bf16.msra.mxu1 %v3305_v56  ;;  %1492 = vmatprep.mubr.bf16.mxu1 %v4426_v39 }
 0x164   : > { %1547 = vmatprep.subr.bf16.mxu1 %v3314_v57 }
 0x167   : > { %1548 = vmatpush1.bf16.msra.mxu1 %v3313_v60 }
 0x168   : > { %1549 = vmatprep.subr.bf16.mxu1 %v3322_v62  ;;  %v3805_v62 = vld [vmem:[#allocation8 + $0x114] ss:$8 sps:$4 sm:$0xff]  }
 0x16a   : > { %1493 = vmatmul.mubr.bf16.gmra.mrb[80].mxu1 %v4431_v47 }
 0x16b   : > { %1550 = vmatpush1.bf16.msra.mxu1 %v3321_v2  ;;  %1502 = vmatprep.mubr.bf16.mxu1 %v4434_v50 }
 0x16c   : > { %1551 = vmatprep.subr.bf16.mxu1 %v3330_v3 }
 0x16f   : > { %1552 = vmatpush1.bf16.msra.mxu1 %v3329_v8  ;;  %v3808_v8 = vld [vmem:[#allocation8 + $0x124] ss:$8 sps:$4 sm:$0xff]  }
 0x170   : > { %1553 = vmatprep.subr.bf16.mxu1 %v3338_v9 }
 0x172   : > { %1503 = vmatmul.mubr.bf16.gmra.mrb[84].mxu1 %v4439_v61 }
 0x173   : > { %1554 = vmatpush1.bf16.msra.mxu1 %v3337_v12  ;;  %1512 = vmatprep.mubr.bf16.mxu1 %v4442_v0 }
 0x174   : > { %1555 = vmatprep.subr.bf16.mxu1 %v3346_v14 }
 0x177   : > { %1556 = vmatpush1.bf16.msra.mxu1 %v3345_v21 }
 0x178   : > { %1557 = vmatprep.subr.bf16.mxu1 %v3354_v23  ;;  %v3811_v23 = vld [vmem:[#allocation8 + $0x134] ss:$8 sps:$4 sm:$0xff]  }
 0x17a   : > { %1513 = vmatmul.mubr.bf16.gmra.mrb[88].mxu1 %v4447_v13 }
 0x17b   : > { %1558 = vmatpush1.bf16.msra.mxu1 %v3353_v27  ;;  %1522 = vmatprep.mubr.bf16.mxu1 %v4450_v19 }
 0x17c   : > { %1559 = vmatprep.subr.bf16.mxu1 %v3362_v29  ;;  %v3809_v29 = vld [vmem:[#allocation8 + $0x130] ss:$8 sps:$4 sm:$0xff]  }
 0x17f   : > { %1560 = vmatpush1.bf16.msra.mxu1 %v3361_v33  ;;  %v3814_v33 = vld [vmem:[#allocation8 + $0x144] ss:$8 sps:$4 sm:$0xff]  }
 0x180   : > { %1561 = vmatprep.subr.bf16.mxu1 %v3370_v34 }
 0x182   : > { %1523 = vmatmul.mubr.bf16.gmra.mrb[92].mxu1 %v4455_v32 }
 0x183   : > { %1562 = vmatpush1.bf16.msra.mxu1 %v3369_v38  ;;  %1565 = vmatprep.mubr.bf16.mxu1 %v4475_v22 }
 0x184   : > { %1563 = vmatprep.subr.bf16.mxu1 %v3378_v40 }
 0x187   : > { %1564 = vmatpush1.bf16.msra.mxu1 %v3377_v41  ;;  %v3812_v41 = vld [vmem:[#allocation8 + $0x140] ss:$8 sps:$4 sm:$0xff]  }
 0x18a   : > { %1566 = vmatmul.mubr.bf16.vlgmr.msra.gmra.mrb[96].mxu1 %v4399_v5  ;;  %v4508_v5 = vrot.slane %v4501_v45, %v436_v44 }
 0x18b   : > { %1575 = vmatprep.mubr.bf16.mxu1 %v4402_v7  ;;  %v4513_v7 = vrot.slane %v4501_v45, %v440_v46 }
 0x192   : > { %1576 = vmatmul.mubr.bf16.gmra.mrb[100].mxu1 %v4407_v15 }
 0x193   : > { %1585 = vmatprep.mubr.bf16.mxu1 %v4410_v18 }
 0x19a   : > { %1586 = vmatmul.mubr.bf16.gmra.mrb[104].mxu1 %v4415_v26 }
 0x19b   : > { %1595 = vmatprep.mubr.bf16.mxu1 %v4418_v28 }
 0x19d   : > { %v1228_v15 = vpop.f32.mrb[0].mxu1 }
 0x19e   : > { %v1229_v18 = vadd.f32 %v1228_v15, %v4508_v5  ;;  %v1230_v22 = vpop.f32.mrb[1].mxu1 }
 0x19f   : > { %v1231_v48 = vadd.f32 %v1230_v22, %v4513_v7  ;;  %v1232_v49 = vpop.f32.mrb[2].mxu1 }
 0x1a0   : > { %v1233_v26 = vadd.f32 %v1232_v49, %v4508_v5  ;;  %v1234_v51 = vpop.f32.mrb[3].mxu1  ;;  %v1646_v53 = vmax.f32 %v1229_v18, 0.0  ;;  %v3817_v18 = vld [vmem:[#allocation8 + $0x154] ss:$8 sps:$4 sm:$0xff]  }
 0x1a1   : > { %v1235_v52 = vadd.f32 %v1234_v51, %v4513_v7  ;;  %v1647_v17 = vmax.f32 %v1231_v48, 0.0 }
 0x1a2   : > { %v1654_v54 = vmax.f32 %v1233_v26, 0.0  ;;  %1596 = vmatmul.mubr.bf16.gmra.mrb[108].mxu1 %v4423_v36  ;;  %v3815_v26 = vld [vmem:[#allocation8 + $0x150] ss:$8 sps:$4 sm:$0xff]  }
 0x1a3   : > { %v1655_v55 = vmax.f32 %v1235_v52, 0.0  ;;  %1605 = vmatprep.mubr.bf16.mxu1 %v4426_v39  ;;  %v3803_v39 = vld [vmem:[#allocation8 + $0x110] ss:$8 sps:$4 sm:$0xff]  }
 0x1a4   : > { %v1774_v28 = vpack.c.bf16 %v1654_v54, %v1646_v53  ;;  %v3820_v53 = vld [vmem:[#allocation8 + $0x164] ss:$8 sps:$4 sm:$0xff]  }
 0x1a5   : > { %v1238_v56 = vpop.f32.mrb[4].mxu1  ;;  %v1775_v57 = vpack.c.bf16 %v1655_v55, %v1647_v17 }
 0x1a6   : > { %v1239_v59 = vadd.f32 %v1238_v56, %v4508_v5  ;;  %v1240_v60 = vpop.f32.mrb[5].mxu1 }
 0x1a7   : > { %v1241_v63 = vadd.f32 %v1240_v60, %v4513_v7  ;;  %v1242_v1 = vpop.f32.mrb[6].mxu1  ;;  %2650 = vmatprep.mubr.bf16.mxu0 %v1775_v57  ;;  %v3818_v57 = vld [vmem:[#allocation8 + $0x160] ss:$8 sps:$4 sm:$0xff]   ;;  %v3823_v60 = vld [vmem:[#allocation8 + $0x174] ss:$8 sps:$4 sm:$0xff]  }
 0x1a8   : > { %v1243_v2 = vadd.f32 %v1242_v1, %v4508_v5  ;;  %v1244_v3 = vpop.f32.mrb[7].mxu1  ;;  %2651 = vmatmul.mubr.bf16.vlgmr.msra.gmra.mrb[0].mxu0 %v1774_v28  ;;  %v1662_v4 = vmax.f32 %v1239_v59, 0.0 }
 0x1a9   : > { %v1245_v36 = vadd.f32 %v1244_v3, %v4513_v7  ;;  %2732 = vmatpush1.bf16.msra.mxu0 %v3800_v58  ;;  %v1663_v9 = vmax.f32 %v1241_v63, 0.0 }
 0x1aa   : > { %v1670_v6 = vmax.f32 %v1243_v2, 0.0  ;;  %1606 = vmatmul.mubr.bf16.gmra.mrb[112].mxu1 %v4431_v47  ;;  %2733 = vmatprep.subr.bf16.mxu0 %v3805_v62  ;;  %v3821_v2 = vld [vmem:[#allocation8 + $0x170] ss:$8 sps:$4 sm:$0xff]  }
 0x1ab   : > { %v1671_v10 = vmax.f32 %v1245_v36, 0.0  ;;  %1615 = vmatprep.mubr.bf16.mxu1 %v4434_v50 }
 0x1ac   : > { %v1782_v11 = vpack.c.bf16 %v1670_v6, %v1662_v4 }
 0x1ad   : > { %v1783_v12 = vpack.c.bf16 %v1671_v10, %v1663_v9  ;;  %v1248_v14 = vpop.f32.mrb[8].mxu1  ;;  %2734 = vmatpush1.bf16.msra.mxu0 %v3803_v39  ;;  %v3826_v39 = vld [vmem:[#allocation8 + $0x184] ss:$8 sps:$4 sm:$0xff]  }
 0x1ae   : > { %v1249_v20 = vadd.f32 %v1248_v14, %v4508_v5  ;;  %v1250_v21 = vpop.f32.mrb[9].mxu1  ;;  %2735 = vmatprep.subr.bf16.mxu0 %v3808_v8 }
 0x1af   : > { %v1251_v24 = vadd.f32 %v1250_v21, %v4513_v7  ;;  %v1252_v25 = vpop.f32.mrb[10].mxu1  ;;  %2660 = vmatprep.mubr.bf16.mxu0 %v1783_v12 }
 0x1b0   : > { %v1253_v47 = vadd.f32 %v1252_v25, %v4508_v5  ;;  %v1254_v27 = vpop.f32.mrb[11].mxu1  ;;  %2661 = vmatmul.mubr.bf16.gmra.mrb[4].mxu0 %v1782_v11  ;;  %v1678_v30 = vmax.f32 %v1249_v20, 0.0  ;;  %v3824_v11 = vld [vmem:[#allocation8 + $0x180] ss:$8 sps:$4 sm:$0xff]   ;;  %v3827_v25 = vld [vmem:[#allocation8 + $0x190] ss:$8 sps:$4 sm:$0xff]  }
 0x1b1   : > { %v1255_v50 = vadd.f32 %v1254_v27, %v4513_v7  ;;  %2736 = vmatpush1.bf16.msra.mxu0 %v3806_v16  ;;  %v1679_v34 = vmax.f32 %v1251_v24, 0.0  ;;  %v3829_v16 = vld [vmem:[#allocation8 + $0x194] ss:$8 sps:$4 sm:$0xff]  }
 0x1b2   : > { %v1686_v31 = vmax.f32 %v1253_v47, 0.0  ;;  %1616 = vmatmul.mubr.bf16.gmra.mrb[116].mxu1 %v4439_v61  ;;  %2737 = vmatprep.subr.bf16.mxu0 %v3811_v23 }
 0x1b3   : > { %v1687_v35 = vmax.f32 %v1255_v50, 0.0  ;;  %1625 = vmatprep.mubr.bf16.mxu1 %v4442_v0  ;;  %v3832_v50 = vld [vmem:[#allocation8 + $0x1a4] ss:$8 sps:$4 sm:$0xff]  }
 0x1b4   : > { %v1790_v37 = vpack.c.bf16 %v1686_v31, %v1678_v30 }
 0x1b5   : > { %v1791_v38 = vpack.c.bf16 %v1687_v35, %v1679_v34  ;;  %v1258_v40 = vpop.f32.mrb[12].mxu1  ;;  %2738 = vmatpush1.bf16.msra.mxu0 %v3809_v29  ;;  %v3830_v35 = vld [vmem:[#allocation8 + $0x1a0] ss:$8 sps:$4 sm:$0xff]  }
 0x1b6   : > { %v1259_v42 = vadd.f32 %v1258_v40, %v4508_v5  ;;  %v1260_v15 = vpop.f32.mrb[13].mxu1  ;;  %2739 = vmatprep.subr.bf16.mxu0 %v3814_v33  ;;  %v3835_v40 = vld [vmem:[#allocation8 + $0x1b4] ss:$8 sps:$4 sm:$0xff]  }
 0x1b7   : > { %v1261_v22 = vadd.f32 %v1260_v15, %v4513_v7  ;;  %v1262_v48 = vpop.f32.mrb[14].mxu1  ;;  %2670 = vmatprep.mubr.bf16.mxu0 %v1791_v38 }
 0x1b8   : > { %v1263_v61 = vadd.f32 %v1262_v48, %v4508_v5  ;;  %v1264_v49 = vpop.f32.mrb[15].mxu1  ;;  %2671 = vmatmul.mubr.bf16.gmra.mrb[8].mxu0 %v1790_v37  ;;  %v1694_v51 = vmax.f32 %v1259_v42, 0.0  ;;  %v3833_v48 = vld [vmem:[#allocation8 + $0x1b0] ss:$8 sps:$4 sm:$0xff]  }
 0x1b9   : > { %v1265_v0 = vadd.f32 %v1264_v49, %v4513_v7  ;;  %2740 = vmatpush1.bf16.msra.mxu0 %v3812_v41  ;;  %v1695_v54 = vmax.f32 %v1261_v22, 0.0 }
 0x1ba   : > { %v1702_v52 = vmax.f32 %v1263_v61, 0.0  ;;  %1626 = vmatmul.mubr.bf16.gmra.mrb[120].mxu1 %v4447_v13  ;;  %2741 = vmatprep.subr.bf16.mxu0 %v3817_v18 }
 0x1bb   : > { %v1703_v17 = vmax.f32 %v1265_v0, 0.0  ;;  %1635 = vmatprep.mubr.bf16.mxu1 %v4450_v19  ;;  %v3838_v0 = vld [vmem:[#allocation8 + $0x1c4] ss:$8 sps:$4 sm:$0xff]  }
 0x1bc   : > { %v1798_v55 = vpack.c.bf16 %v1702_v52, %v1694_v51 }
 0x1bd   : > { %v1799_v28 = vpack.c.bf16 %v1703_v17, %v1695_v54  ;;  %v1268_v56 = vpop.f32.mrb[16].mxu1  ;;  %2742 = vmatpush1.bf16.msra.mxu0 %v3815_v26  ;;  %v3836_v17 = vld [vmem:[#allocation8 + $0x1c0] ss:$8 sps:$4 sm:$0xff]  }
 0x1be   : > { %v1269_v58 = vadd.f32 %v1268_v56, %v4508_v5  ;;  %v1270_v59 = vpop.f32.mrb[17].mxu1  ;;  %2743 = vmatprep.subr.bf16.mxu0 %v3820_v53  ;;  %v3841_v56 = vld [vmem:[#allocation8 + $0x1d4] ss:$8 sps:$4 sm:$0xff]  }
 0x1bf   : > { %v1271_v62 = vadd.f32 %v1270_v59, %v4513_v7  ;;  %v1272_v63 = vpop.f32.mrb[18].mxu1  ;;  %2680 = vmatprep.mubr.bf16.mxu0 %v1799_v28 }
 0x1c0   : > { %v1273_v13 = vadd.f32 %v1272_v63, %v4508_v5  ;;  %v1274_v1 = vpop.f32.mrb[19].mxu1  ;;  %2681 = vmatmul.mubr.bf16.gmra.mrb[12].mxu0 %v1798_v55  ;;  %v1710_v3 = vmax.f32 %v1269_v58, 0.0 }
 0x1c1   : > { %v1275_v19 = vadd.f32 %v1274_v1, %v4513_v7  ;;  %2744 = vmatpush1.bf16.msra.mxu0 %v3818_v57  ;;  %v1711_v4 = vmax.f32 %v1271_v62, 0.0  ;;  %v444_v57 = vsub.s32 2, %v4497_v43  ;;  %v3839_v1 = vld [vmem:[#allocation8 + $0x1d0] ss:$8 sps:$4 sm:$0xff]  }
 0x1c2   : > { %v1718_v36 = vmax.f32 %v1273_v13, 0.0  ;;  %1636 = vmatmul.mubr.bf16.gmra.mrb[124].mxu1 %v4455_v32  ;;  %2745 = vmatprep.subr.bf16.mxu0 %v3823_v60  ;;  %v448_v60 = vsub.s32 3, %v4497_v43 }
 0x1c3   : > { %v1719_v6 = vmax.f32 %v1275_v19, 0.0 }
 0x1c4   : > { %v1806_v8 = vpack.c.bf16 %v1718_v36, %v1710_v3  ;;  %v4560_v3 = vrot.slane %v4501_v45, %v444_v57  ;;  %v3844_v36 = vld [vmem:[#allocation8 + $0x1e4] ss:$8 sps:$4 sm:$0xff]  }
 0x1c5   : > { %v1807_v9 = vpack.c.bf16 %v1719_v6, %v1711_v4  ;;  %v1278_v10 = vpop.f32.mrb[20].mxu1  ;;  %2746 = vmatpush1.bf16.msra.mxu0 %v3821_v2  ;;  %v4563_v6 = vrot.slane %v4501_v45, %v448_v60  ;;  %v3857_v60 = vld [vmem:[#allocation8 + $0x230] ss:$8 sps:$4 sm:$0xff]  }
 0x1c6   : > { %v1279_v12 = vadd.f32 %v1278_v10, %v4508_v5  ;;  %v1280_v14 = vpop.f32.mrb[21].mxu1  ;;  %2747 = vmatprep.subr.bf16.mxu0 %v3826_v39  ;;  %v3842_v10 = vld [vmem:[#allocation8 + $0x1e0] ss:$8 sps:$4 sm:$0xff]  }
 0x1c7   : > { %v1281_v20 = vadd.f32 %v1280_v14, %v4513_v7  ;;  %v1282_v21 = vpop.f32.mrb[22].mxu1  ;;  %2690 = vmatprep.mubr.bf16.mxu0 %v1807_v9 }
 0x1c8   : > { %v1283_v32 = vadd.f32 %v1282_v21, %v4508_v5  ;;  %v1284_v23 = vpop.f32.mrb[23].mxu1  ;;  %2691 = vmatmul.mubr.bf16.gmra.mrb[16].mxu0 %v1806_v8  ;;  %v1726_v47 = vmax.f32 %v1279_v12, 0.0  ;;  %v3847_v12 = vld [vmem:[#allocation8 + $0x1f4] ss:$8 sps:$4 sm:$0xff]  }
 0x1c9   : > { %v1285_v24 = vadd.f32 %v1284_v23, %v4513_v7  ;;  %2748 = vmatpush1.bf16.msra.mxu0 %v3824_v11  ;;  %v1727_v29 = vmax.f32 %v1281_v20, 0.0  ;;  %v3845_v23 = vld [vmem:[#allocation8 + $0x1f0] ss:$8 sps:$4 sm:$0xff]  }
 0x1ca   : > { %v1734_v27 = vmax.f32 %v1283_v32, 0.0  ;;  %2749 = vmatprep.subr.bf16.mxu0 %v3829_v16 }
 0x1cb   : > { %v1735_v30 = vmax.f32 %v1285_v24, 0.0 }
 0x1cc   : > { %v1814_v31 = vpack.c.bf16 %v1734_v27, %v1726_v47  ;;  %v3850_v47 = vld [vmem:[#allocation8 + $0x204] ss:$8 sps:$4 sm:$0xff]  }
 0x1cd   : > { %v1815_v33 = vpack.c.bf16 %v1735_v30, %v1727_v29  ;;  %v1288_v34 = vpop.f32.mrb[24].mxu1  ;;  %2750 = vmatpush1.bf16.msra.mxu0 %v3827_v25 }
 0x1ce   : > { %v1289_v37 = vadd.f32 %v1288_v34, %v4508_v5  ;;  %v1290_v38 = vpop.f32.mrb[25].mxu1  ;;  %2751 = vmatprep.subr.bf16.mxu0 %v3832_v50 }
 0x1cf   : > { %v1291_v41 = vadd.f32 %v1290_v38, %v4513_v7  ;;  %v1292_v42 = vpop.f32.mrb[26].mxu1  ;;  %2700 = vmatprep.mubr.bf16.mxu0 %v1815_v33  ;;  %v3848_v33 = vld [vmem:[#allocation8 + $0x200] ss:$8 sps:$4 sm:$0xff]  }
 0x1d0   : > { %v1293_v15 = vadd.f32 %v1292_v42, %v4508_v5  ;;  %v1294_v18 = vpop.f32.mrb[27].mxu1  ;;  %2701 = vmatmul.mubr.bf16.gmra.mrb[20].mxu0 %v1814_v31  ;;  %v1742_v61 = vmax.f32 %v1289_v37, 0.0  ;;  %v3853_v37 = vld [vmem:[#allocation8 + $0x214] ss:$8 sps:$4 sm:$0xff]  }
 0x1d1   : > { %v1295_v22 = vadd.f32 %v1294_v18, %v4513_v7  ;;  %2752 = vmatpush1.bf16.msra.mxu0 %v3830_v35  ;;  %v1743_v26 = vmax.f32 %v1291_v41, 0.0  ;;  %v3851_v18 = vld [vmem:[#allocation8 + $0x210] ss:$8 sps:$4 sm:$0xff]  }
 0x1d2   : > { %v1750_v49 = vmax.f32 %v1293_v15, 0.0  ;;  %2753 = vmatprep.subr.bf16.mxu0 %v3835_v40 }
 0x1d3   : > { %v1751_v51 = vmax.f32 %v1295_v22, 0.0 }
 0x1d4   : > { %v1822_v52 = vpack.c.bf16 %v1750_v49, %v1742_v61  ;;  %v3856_v61 = vld [vmem:[#allocation8 + $0x224] ss:$8 sps:$4 sm:$0xff]  }
 0x1d5   : > { %v1823_v53 = vpack.c.bf16 %v1751_v51, %v1743_v26  ;;  %v1298_v54 = vpop.f32.mrb[28].mxu1  ;;  %2754 = vmatpush1.bf16.msra.mxu0 %v3833_v48 }
 0x1d6   : > { %v1299_v55 = vadd.f32 %v1298_v54, %v4508_v5  ;;  %v1300_v28 = vpop.f32.mrb[29].mxu1  ;;  %2755 = vmatprep.subr.bf16.mxu0 %v3838_v0 }
 0x1d7   : > { %v1301_v58 = vadd.f32 %v1300_v28, %v4513_v7  ;;  %v1302_v59 = vpop.f32.mrb[30].mxu1  ;;  %2710 = vmatprep.mubr.bf16.mxu0 %v1823_v53  ;;  %v3854_v53 = vld [vmem:[#allocation8 + $0x220] ss:$8 sps:$4 sm:$0xff]  }
 0x1d8   : > { %v1303_v62 = vadd.f32 %v1302_v59, %v4508_v5  ;;  %v1304_v63 = vpop.f32.mrb[31].mxu1  ;;  %2711 = vmatmul.mubr.bf16.gmra.mrb[24].mxu0 %v1822_v52  ;;  %v1758_v19 = vmax.f32 %v1299_v55, 0.0  ;;  %v3859_v55 = vld [vmem:[#allocation8 + $0x234] ss:$8 sps:$4 sm:$0xff]  }
 0x1d9   : > { %v1305_v13 = vadd.f32 %v1304_v63, %v4513_v7  ;;  %2756 = vmatpush1.bf16.msra.mxu0 %v3836_v17  ;;  %v1759_v39 = vmax.f32 %v1301_v58, 0.0 }
 0x1da   : > { %v1766_v2 = vmax.f32 %v1303_v62, 0.0  ;;  %2757 = vmatprep.subr.bf16.mxu0 %v3841_v56 }
 0x1db   : > { %v1767_v4 = vmax.f32 %v1305_v13, 0.0  ;;  %v3862_v13 = vld [vmem:[#allocation8 + $0x244] ss:$8 sps:$4 sm:$0xff]  }
 0x1dc   : > { %v1830_v8 = vpack.c.bf16 %v1766_v2, %v1758_v19 }
 0x1dd   : > { %v1831_v5 = vpack.c.bf16 %v1767_v4, %v1759_v39  ;;  %v1341_v9 = vpop.f32.mrb[32].mxu1  ;;  %2758 = vmatpush1.bf16.msra.mxu0 %v3839_v1  ;;  %v3860_v4 = vld [vmem:[#allocation8 + $0x240] ss:$8 sps:$4 sm:$0xff]  }
 0x1de   : > { %v1342_v7 = vadd.f32 %v1341_v9, %v4560_v3  ;;  %v1343_v11 = vpop.f32.mrb[33].mxu1  ;;  %2759 = vmatprep.subr.bf16.mxu0 %v3844_v36  ;;  %v3865_v9 = vld [vmem:[#allocation8 + $0x254] ss:$8 sps:$4 sm:$0xff]  }
 0x1df   : > { %v1344_v14 = vadd.f32 %v1343_v11, %v4563_v6  ;;  %v1345_v16 = vpop.f32.mrb[34].mxu1  ;;  %2720 = vmatprep.mubr.bf16.mxu0 %v1831_v5 }
 0x1e0   : > { %v1346_v20 = vadd.f32 %v1345_v16, %v4560_v3  ;;  %v1347_v21 = vpop.f32.mrb[35].mxu1  ;;  %2721 = vmatmul.mubr.bf16.gmra.mrb[28].mxu0 %v1830_v8  ;;  %v1648_v24 = vmax.f32 %v1342_v7, 0.0  ;;  %v3863_v16 = vld [vmem:[#allocation8 + $0x250] ss:$8 sps:$4 sm:$0xff]  }
 0x1e1   : > { %v1348_v32 = vadd.f32 %v1347_v21, %v4563_v6  ;;  %2760 = vmatpush1.bf16.msra.mxu0 %v3842_v10  ;;  %v1649_v27 = vmax.f32 %v1344_v14, 0.0 }
 0x1e2   : > { %v1656_v25 = vmax.f32 %v1346_v20, 0.0  ;;  %2761 = vmatprep.subr.bf16.mxu0 %v3847_v12 }
 0x1e3   : > { %v1657_v50 = vmax.f32 %v1348_v32, 0.0  ;;  %v3868_v32 = vld [vmem:[#allocation8 + $0x264] ss:$8 sps:$4 sm:$0xff]  }
 0x1e4   : > { %v1776_v29 = vpack.c.bf16 %v1656_v25, %v1648_v24 }
 0x1e5   : > { %v1777_v30 = vpack.c.bf16 %v1657_v50, %v1649_v27  ;;  %v1351_v31 = vpop.f32.mrb[36].mxu1  ;;  %2762 = vmatpush1.bf16.msra.mxu0 %v3845_v23  ;;  %v3866_v50 = vld [vmem:[#allocation8 + $0x260] ss:$8 sps:$4 sm:$0xff]  }
 0x1e6   : > { %v1352_v34 = vadd.f32 %v1351_v31, %v4560_v3  ;;  %v1353_v35 = vpop.f32.mrb[37].mxu1  ;;  %2844 = vmatprep.subr.bf16.mxu0 %v3850_v47  ;;  %v3871_v31 = vld [vmem:[#allocation8 + $0x274] ss:$8 sps:$4 sm:$0xff]  }
 0x1e7   : > { %v1354_v38 = vadd.f32 %v1353_v35, %v4563_v6  ;;  %v1355_v40 = vpop.f32.mrb[38].mxu1  ;;  %2763 = vmatprep.mubr.bf16.mxu0 %v1777_v30 }
 0x1e8   : > { %v1356_v41 = vadd.f32 %v1355_v40, %v4560_v3  ;;  %v1357_v42 = vpop.f32.mrb[39].mxu1  ;;  %2764 = vmatmul.mubr.bf16.vlgmr.msra.gmra.mrb[0].mxu0 %v1776_v29  ;;  %v1664_v22 = vmax.f32 %v1352_v34, 0.0  ;;  %v3869_v40 = vld [vmem:[#allocation8 + $0x270] ss:$8 sps:$4 sm:$0xff]  }
 0x1e9   : > { %v1358_v15 = vadd.f32 %v1357_v42, %v4563_v6  ;;  %2845 = vmatpush1.bf16.msra.mxu0 %v3848_v33  ;;  %v1665_v49 = vmax.f32 %v1354_v38, 0.0 }
 0x1ea   : > { %v1672_v48 = vmax.f32 %v1356_v41, 0.0  ;;  %2846 = vmatprep.subr.bf16.mxu0 %v3853_v37 }
 0x1eb   : > { %v1673_v0 = vmax.f32 %v1358_v15, 0.0  ;;  %v3874_v15 = vld [vmem:[#allocation8 + $0x284] ss:$8 sps:$4 sm:$0xff]  }
 0x1ec   : > { %v1784_v26 = vpack.c.bf16 %v1672_v48, %v1664_v22 }
 0x1ed   : > { %v1785_v51 = vpack.c.bf16 %v1673_v0, %v1665_v49  ;;  %v1361_v52 = vpop.f32.mrb[40].mxu1  ;;  %2847 = vmatpush1.bf16.msra.mxu0 %v3851_v18  ;;  %v3872_v0 = vld [vmem:[#allocation8 + $0x280] ss:$8 sps:$4 sm:$0xff]  }
 0x1ee   : > { %v1362_v54 = vadd.f32 %v1361_v52, %v4560_v3  ;;  %v1363_v17 = vpop.f32.mrb[41].mxu1  ;;  %2848 = vmatprep.subr.bf16.mxu0 %v3856_v61  ;;  %v3877_v52 = vld [vmem:[#allocation8 + $0x294] ss:$8 sps:$4 sm:$0xff]  }
 0x1ef   : > { %v1364_v28 = vadd.f32 %v1363_v17, %v4563_v6  ;;  %v1365_v56 = vpop.f32.mrb[42].mxu1  ;;  %2773 = vmatprep.mubr.bf16.mxu0 %v1785_v51 }
 0x1f0   : > { %v1366_v57 = vadd.f32 %v1365_v56, %v4560_v3  ;;  %v1367_v58 = vpop.f32.mrb[43].mxu1  ;;  %2774 = vmatmul.mubr.bf16.gmra.mrb[4].mxu0 %v1784_v26  ;;  %v1680_v62 = vmax.f32 %v1362_v54, 0.0  ;;  %v3875_v56 = vld [vmem:[#allocation8 + $0x290] ss:$8 sps:$4 sm:$0xff]  }
 0x1f1   : > { %v1368_v59 = vadd.f32 %v1367_v58, %v4563_v6  ;;  %2849 = vmatpush1.bf16.msra.mxu0 %v3854_v53  ;;  %v1681_v1 = vmax.f32 %v1364_v28, 0.0 }
 0x1f2   : > { %v1688_v63 = vmax.f32 %v1366_v57, 0.0  ;;  %2850 = vmatprep.subr.bf16.mxu0 %v3859_v55 }
 0x1f3   : > { %v1689_v19 = vmax.f32 %v1368_v59, 0.0  ;;  %v3880_v59 = vld [vmem:[#allocation8 + $0x2a4] ss:$8 sps:$4 sm:$0xff]  }
 0x1f4   : > { %v1792_v2 = vpack.c.bf16 %v1688_v63, %v1680_v62 }
 0x1f5   : > { %v1793_v36 = vpack.c.bf16 %v1689_v19, %v1681_v1  ;;  %v1371_v39 = vpop.f32.mrb[44].mxu1  ;;  %2851 = vmatpush1.bf16.msra.mxu0 %v3857_v60  ;;  %v3878_v19 = vld [vmem:[#allocation8 + $0x2a0] ss:$8 sps:$4 sm:$0xff]  }
 0x1f6   : > { %v1372_v8 = vadd.f32 %v1371_v39, %v4560_v3  ;;  %v1373_v5 = vpop.f32.mrb[45].mxu1  ;;  %2852 = vmatprep.subr.bf16.mxu0 %v3862_v13  ;;  %v3883_v39 = vld [vmem:[#allocation8 + $0x2b4] ss:$8 sps:$4 sm:$0xff]  }
 0x1f7   : > { %v1374_v10 = vadd.f32 %v1373_v5, %v4563_v6  ;;  %v1375_v7 = vpop.f32.mrb[46].mxu1  ;;  %2783 = vmatprep.mubr.bf16.mxu0 %v1793_v36 }
 0x1f8   : > { %v1376_v11 = vadd.f32 %v1375_v7, %v4560_v3  ;;  %v1377_v12 = vpop.f32.mrb[47].mxu1  ;;  %2784 = vmatmul.mubr.bf16.gmra.mrb[8].mxu0 %v1792_v2  ;;  %v1696_v20 = vmax.f32 %v1372_v8, 0.0  ;;  %v3881_v7 = vld [vmem:[#allocation8 + $0x2b0] ss:$8 sps:$4 sm:$0xff]  }
 0x1f9   : > { %v1378_v14 = vadd.f32 %v1377_v12, %v4563_v6  ;;  %2853 = vmatpush1.bf16.msra.mxu0 %v3860_v4  ;;  %v1697_v23 = vmax.f32 %v1374_v10, 0.0 }
 0x1fa   : > { %v1704_v21 = vmax.f32 %v1376_v11, 0.0  ;;  %2854 = vmatprep.subr.bf16.mxu0 %v3865_v9 }
 0x1fb   : > { %v1705_v24 = vmax.f32 %v1378_v14, 0.0  ;;  %v3886_v14 = vld [vmem:[#allocation8 + $0x2c4] ss:$8 sps:$4 sm:$0xff]  }
 0x1fc   : > { %v1800_v25 = vpack.c.bf16 %v1704_v21, %v1696_v20 }
 0x1fd   : > { %v1801_v47 = vpack.c.bf16 %v1705_v24, %v1697_v23  ;;  %v1381_v27 = vpop.f32.mrb[48].mxu1  ;;  %2855 = vmatpush1.bf16.msra.mxu0 %v3863_v16  ;;  %v3884_v24 = vld [vmem:[#allocation8 + $0x2c0] ss:$8 sps:$4 sm:$0xff]  }
 0x1fe   : > { %v1382_v29 = vadd.f32 %v1381_v27, %v4560_v3  ;;  %v1383_v30 = vpop.f32.mrb[49].mxu1  ;;  %2856 = vmatprep.subr.bf16.mxu0 %v3868_v32  ;;  %v3889_v27 = vld [vmem:[#allocation8 + $0x2d4] ss:$8 sps:$4 sm:$0xff]  }
 0x1ff   : > { %v1384_v33 = vadd.f32 %v1383_v30, %v4563_v6  ;;  %v1385_v34 = vpop.f32.mrb[50].mxu1  ;;  %2793 = vmatprep.mubr.bf16.mxu0 %v1801_v47 }
 0x200   : > { %v1386_v35 = vadd.f32 %v1385_v34, %v4560_v3  ;;  %v1387_v37 = vpop.f32.mrb[51].mxu1  ;;  %2794 = vmatmul.mubr.bf16.gmra.mrb[12].mxu0 %v1800_v25  ;;  %v1712_v41 = vmax.f32 %v1382_v29, 0.0 }
 0x201   : > { %v1388_v38 = vadd.f32 %v1387_v37, %v4563_v6  ;;  %2857 = vmatpush1.bf16.msra.mxu0 %v3866_v50  ;;  %v1713_v18 = vmax.f32 %v1384_v33, 0.0  ;;  %v452_v50 = vsub.s32 4, %v4497_v43  ;;  %v3887_v37 = vld [vmem:[#allocation8 + $0x2d0] ss:$8 sps:$4 sm:$0xff]  }
 0x202   : > { %v1720_v42 = vmax.f32 %v1386_v35, 0.0  ;;  %2858 = vmatprep.subr.bf16.mxu0 %v3871_v31  ;;  %v456_v31 = vsub.s32 5, %v4497_v43 }
 0x203   : > { %v1721_v22 = vmax.f32 %v1388_v38, 0.0 }
 0x204   : > { %v1808_v48 = vpack.c.bf16 %v1720_v42, %v1712_v41  ;;  %v4600_v41 = vrot.slane %v4501_v45, %v452_v50  ;;  %v3892_v42 = vld [vmem:[#allocation8 + $0x2e4] ss:$8 sps:$4 sm:$0xff]  }
 0x205   : > { %v1809_v61 = vpack.c.bf16 %v1721_v22, %v1713_v18  ;;  %v1391_v49 = vpop.f32.mrb[52].mxu1  ;;  %2859 = vmatpush1.bf16.msra.mxu0 %v3869_v40  ;;  %v4603_v22 = vrot.slane %v4501_v45, %v456_v31 }
 0x206   : > { %v1392_v26 = vadd.f32 %v1391_v49, %v4560_v3  ;;  %v1393_v51 = vpop.f32.mrb[53].mxu1  ;;  %2860 = vmatprep.subr.bf16.mxu0 %v3874_v15  ;;  %v3890_v49 = vld [vmem:[#allocation8 + $0x2e0] ss:$8 sps:$4 sm:$0xff]  }
 0x207   : > { %v1394_v53 = vadd.f32 %v1393_v51, %v4563_v6  ;;  %v1395_v54 = vpop.f32.mrb[54].mxu1  ;;  %2803 = vmatprep.mubr.bf16.mxu0 %v1809_v61 }
 0x208   : > { %v1396_v17 = vadd.f32 %v1395_v54, %v4560_v3  ;;  %v1397_v55 = vpop.f32.mrb[55].mxu1  ;;  %2804 = vmatmul.mubr.bf16.gmra.mrb[16].mxu0 %v1808_v48  ;;  %v1728_v57 = vmax.f32 %v1392_v26, 0.0  ;;  %v3895_v26 = vld [vmem:[#allocation8 + $0x2f4] ss:$8 sps:$4 sm:$0xff]  }
 0x209   : > { %v1398_v28 = vadd.f32 %v1397_v55, %v4563_v6  ;;  %2861 = vmatpush1.bf16.msra.mxu0 %v3872_v0  ;;  %v1729_v60 = vmax.f32 %v1394_v53, 0.0 }
 0x20a   : > { %v1736_v58 = vmax.f32 %v1396_v17, 0.0  ;;  %2862 = vmatprep.subr.bf16.mxu0 %v3877_v52  ;;  %v3893_v17 = vld [vmem:[#allocation8 + $0x2f0] ss:$8 sps:$4 sm:$0xff]  }
 0x20b   : > { %v1737_v62 = vmax.f32 %v1398_v28, 0.0 }
 0x20c   : > { %v1816_v63 = vpack.c.bf16 %v1736_v58, %v1728_v57 }
 0x20d   : > { %v1817_v13 = vpack.c.bf16 %v1737_v62, %v1729_v60  ;;  %v1401_v1 = vpop.f32.mrb[56].mxu1  ;;  %2863 = vmatpush1.bf16.msra.mxu0 %v3875_v56  ;;  %v3898_v56 = vld [vmem:[#allocation8 + $0x304] ss:$8 sps:$4 sm:$0xff]  }
 0x20e   : > { %v1402_v2 = vadd.f32 %v1401_v1, %v4560_v3  ;;  %v1403_v36 = vpop.f32.mrb[57].mxu1  ;;  %2864 = vmatprep.subr.bf16.mxu0 %v3880_v59 }
 0x20f   : > { %v1404_v4 = vadd.f32 %v1403_v36, %v4563_v6  ;;  %v1405_v8 = vpop.f32.mrb[58].mxu1  ;;  %2813 = vmatprep.mubr.bf16.mxu0 %v1817_v13 }
 0x210   : > { %v1406_v5 = vadd.f32 %v1405_v8, %v4560_v3  ;;  %v1407_v9 = vpop.f32.mrb[59].mxu1  ;;  %2814 = vmatmul.mubr.bf16.gmra.mrb[20].mxu0 %v1816_v63  ;;  %v1744_v11 = vmax.f32 %v1402_v2, 0.0  ;;  %v3896_v63 = vld [vmem:[#allocation8 + $0x300] ss:$8 sps:$4 sm:$0xff]  }
 0x211   : > { %v1408_v10 = vadd.f32 %v1407_v9, %v4563_v6  ;;  %2865 = vmatpush1.bf16.msra.mxu0 %v3878_v19  ;;  %v1745_v16 = vmax.f32 %v1404_v4, 0.0  ;;  %v3901_v19 = vld [vmem:[#allocation8 + $0x314] ss:$8 sps:$4 sm:$0xff]  }
 0x212   : > { %v1752_v12 = vmax.f32 %v1406_v5, 0.0  ;;  %2866 = vmatprep.subr.bf16.mxu0 %v3883_v39  ;;  %v3899_v5 = vld [vmem:[#allocation8 + $0x310] ss:$8 sps:$4 sm:$0xff]  }
 0x213   : > { %v1753_v20 = vmax.f32 %v1408_v10, 0.0 }
 0x214   : > { %v1824_v21 = vpack.c.bf16 %v1752_v12, %v1744_v11 }
 0x215   : > { %v1825_v32 = vpack.c.bf16 %v1753_v20, %v1745_v16  ;;  %v1411_v23 = vpop.f32.mrb[60].mxu1  ;;  %2867 = vmatpush1.bf16.msra.mxu0 %v3881_v7  ;;  %v3904_v7 = vld [vmem:[#allocation8 + $0x324] ss:$8 sps:$4 sm:$0xff]  }
 0x216   : > { %v1412_v25 = vadd.f32 %v1411_v23, %v4560_v3  ;;  %v1413_v47 = vpop.f32.mrb[61].mxu1  ;;  %2868 = vmatprep.subr.bf16.mxu0 %v3886_v14 }
 0x217   : > { %v1414_v29 = vadd.f32 %v1413_v47, %v4563_v6  ;;  %v1415_v30 = vpop.f32.mrb[62].mxu1  ;;  %2823 = vmatprep.mubr.bf16.mxu0 %v1825_v32 }
 0x218   : > { %v1416_v33 = vadd.f32 %v1415_v30, %v4560_v3  ;;  %v1417_v34 = vpop.f32.mrb[63].mxu1  ;;  %2824 = vmatmul.mubr.bf16.gmra.mrb[24].mxu0 %v1824_v21  ;;  %v1760_v38 = vmax.f32 %v1412_v25, 0.0  ;;  %v3902_v21 = vld [vmem:[#allocation8 + $0x320] ss:$8 sps:$4 sm:$0xff]   ;;  %v3905_v30 = vld [vmem:[#allocation8 + $0x330] ss:$8 sps:$4 sm:$0xff]  }
 0x219   : > { %v1418_v35 = vadd.f32 %v1417_v34, %v4563_v6  ;;  %2869 = vmatpush1.bf16.msra.mxu0 %v3884_v24  ;;  %v1761_v15 = vmax.f32 %v1414_v29, 0.0  ;;  %v3907_v24 = vld [vmem:[#allocation8 + $0x334] ss:$8 sps:$4 sm:$0xff]   ;;  %v3910_v34 = vld [vmem:[#allocation8 + $0x344] ss:$8 sps:$4 sm:$0xff]  }
 0x21a   : > { %v1768_v40 = vmax.f32 %v1416_v33, 0.0  ;;  %2870 = vmatprep.subr.bf16.mxu0 %v3889_v27 }
 0x21b   : > { %v1769_v18 = vmax.f32 %v1418_v35, 0.0 }
 0x21c   : > { %v1832_v48 = vpack.c.bf16 %v1768_v40, %v1760_v38 }
 0x21d   : > { %v1833_v3 = vpack.c.bf16 %v1769_v18, %v1761_v15  ;;  %v1454_v61 = vpop.f32.mrb[64].mxu1  ;;  %2871 = vmatpush1.bf16.msra.mxu0 %v3887_v37  ;;  %v3908_v15 = vld [vmem:[#allocation8 + $0x340] ss:$8 sps:$4 sm:$0xff]  }
 0x21e   : > { %v1455_v6 = vadd.f32 %v1454_v61, %v4600_v41  ;;  %v1456_v0 = vpop.f32.mrb[65].mxu1  ;;  %2872 = vmatprep.subr.bf16.mxu0 %v3892_v42 }
 0x21f   : > { %v1457_v51 = vadd.f32 %v1456_v0, %v4603_v22  ;;  %v1458_v52 = vpop.f32.mrb[66].mxu1  ;;  %2833 = vmatprep.mubr.bf16.mxu0 %v1833_v3  ;;  %v3913_v3 = vld [vmem:[#allocation8 + $0x354] ss:$8 sps:$4 sm:$0xff]  }
 0x220   : > { %v1459_v53 = vadd.f32 %v1458_v52, %v4600_v41  ;;  %v1460_v54 = vpop.f32.mrb[67].mxu1  ;;  %2834 = vmatmul.mubr.bf16.gmra.mrb[28].mxu0 %v1832_v48  ;;  %v1650_v55 = vmax.f32 %v1455_v6, 0.0 }
 0x221   : > { %v1461_v45 = vadd.f32 %v1460_v54, %v4603_v22  ;;  %2873 = vmatpush1.bf16.msra.mxu0 %v3890_v49  ;;  %v1651_v57 = vmax.f32 %v1457_v51, 0.0  ;;  %v3911_v51 = vld [vmem:[#allocation8 + $0x350] ss:$8 sps:$4 sm:$0xff]   ;;  %v3916_v54 = vld [vmem:[#allocation8 + $0x364] ss:$8 sps:$4 sm:$0xff]  }
 0x222   : > { %v1658_v28 = vmax.f32 %v1459_v53, 0.0  ;;  %2874 = vmatprep.subr.bf16.mxu0 %v3895_v26 }
 0x223   : > { %v1659_v58 = vmax.f32 %v1461_v45, 0.0 }
 0x224   : > { %v1778_v59 = vpack.c.bf16 %v1658_v28, %v1650_v55 }
 0x225   : > { %v1779_v60 = vpack.c.bf16 %v1659_v58, %v1651_v57  ;;  %v1464_v62 = vpop.f32.mrb[68].mxu1  ;;  %2875 = vmatpush1.bf16.msra.mxu0 %v3893_v17  ;;  %v3914_v57 = vld [vmem:[#allocation8 + $0x360] ss:$8 sps:$4 sm:$0xff]  }
 0x226   : > { %v1465_v13 = vadd.f32 %v1464_v62, %v4600_v41  ;;  %v1466_v1 = vpop.f32.mrb[69].mxu1  ;;  %2957 = vmatprep.subr.bf16.mxu0 %v3898_v56 }
 0x227   : > { %v1467_v2 = vadd.f32 %v1466_v1, %v4603_v22  ;;  %v1468_v36 = vpop.f32.mrb[70].mxu1  ;;  %2876 = vmatprep.mubr.bf16.mxu0 %v1779_v60  ;;  %v3919_v60 = vld [vmem:[#allocation8 + $0x374] ss:$8 sps:$4 sm:$0xff]  }
 0x228   : > { %v1469_v39 = vadd.f32 %v1468_v36, %v4600_v41  ;;  %v1470_v4 = vpop.f32.mrb[71].mxu1  ;;  %2877 = vmatmul.mubr.bf16.vlgmr.msra.gmra.mrb[0].mxu0 %v1778_v59  ;;  %v1666_v9 = vmax.f32 %v1465_v13, 0.0 }
 0x229   : > { %v1471_v8 = vadd.f32 %v1470_v4, %v4603_v22  ;;  %2958 = vmatpush1.bf16.msra.mxu0 %v3896_v63  ;;  %v1667_v11 = vmax.f32 %v1467_v2, 0.0  ;;  %v3917_v2 = vld [vmem:[#allocation8 + $0x370] ss:$8 sps:$4 sm:$0xff]   ;;  %v3922_v4 = vld [vmem:[#allocation8 + $0x384] ss:$8 sps:$4 sm:$0xff]  }
 0x22a   : > { %v1674_v10 = vmax.f32 %v1469_v39, 0.0  ;;  %2959 = vmatprep.subr.bf16.mxu0 %v3901_v19 }
 0x22b   : > { %v1675_v12 = vmax.f32 %v1471_v8, 0.0 }
 0x22c   : > { %v1786_v14 = vpack.c.bf16 %v1674_v10, %v1666_v9 }
 0x22d   : > { %v1787_v16 = vpack.c.bf16 %v1675_v12, %v1667_v11  ;;  %v1474_v20 = vpop.f32.mrb[72].mxu1  ;;  %2960 = vmatpush1.bf16.msra.mxu0 %v3899_v5  ;;  %v3920_v11 = vld [vmem:[#allocation8 + $0x380] ss:$8 sps:$4 sm:$0xff]  }
 0x22e   : > { %v1475_v32 = vadd.f32 %v1474_v20, %v4600_v41  ;;  %v1476_v23 = vpop.f32.mrb[73].mxu1  ;;  %2961 = vmatprep.subr.bf16.mxu0 %v3904_v7 }
 0x22f   : > { %v1477_v25 = vadd.f32 %v1476_v23, %v4603_v22  ;;  %v1478_v47 = vpop.f32.mrb[74].mxu1  ;;  %2886 = vmatprep.mubr.bf16.mxu0 %v1787_v16  ;;  %v3925_v16 = vld [vmem:[#allocation8 + $0x394] ss:$8 sps:$4 sm:$0xff]  }
 0x230   : > { %v1479_v27 = vadd.f32 %v1478_v47, %v4600_v41  ;;  %v1480_v50 = vpop.f32.mrb[75].mxu1  ;;  %2887 = vmatmul.mubr.bf16.gmra.mrb[4].mxu0 %v1786_v14  ;;  %v1682_v31 = vmax.f32 %v1475_v32, 0.0 }
 0x231   : > { %v1481_v29 = vadd.f32 %v1480_v50, %v4603_v22  ;;  %2962 = vmatpush1.bf16.msra.mxu0 %v3902_v21  ;;  %v1683_v35 = vmax.f32 %v1477_v25, 0.0  ;;  %v3923_v25 = vld [vmem:[#allocation8 + $0x390] ss:$8 sps:$4 sm:$0xff]   ;;  %v3928_v50 = vld [vmem:[#allocation8 + $0x3a4] ss:$8 sps:$4 sm:$0xff]  }
 0x232   : > { %v1690_v33 = vmax.f32 %v1479_v27, 0.0  ;;  %2963 = vmatprep.subr.bf16.mxu0 %v3907_v24 }
 0x233   : > { %v1691_v37 = vmax.f32 %v1481_v29, 0.0 }
 0x234   : > { %v1794_v38 = vpack.c.bf16 %v1690_v33, %v1682_v31 }
 0x235   : > { %v1795_v40 = vpack.c.bf16 %v1691_v37, %v1683_v35  ;;  %v1484_v42 = vpop.f32.mrb[76].mxu1  ;;  %2964 = vmatpush1.bf16.msra.mxu0 %v3905_v30  ;;  %v3926_v35 = vld [vmem:[#allocation8 + $0x3a0] ss:$8 sps:$4 sm:$0xff]  }
 0x236   : > { %v1485_v18 = vadd.f32 %v1484_v42, %v4600_v41  ;;  %v1486_v48 = vpop.f32.mrb[77].mxu1  ;;  %2965 = vmatprep.subr.bf16.mxu0 %v3910_v34 }
 0x237   : > { %v1487_v61 = vadd.f32 %v1486_v48, %v4603_v22  ;;  %v1488_v49 = vpop.f32.mrb[78].mxu1  ;;  %2896 = vmatprep.mubr.bf16.mxu0 %v1795_v40  ;;  %v3931_v40 = vld [vmem:[#allocation8 + $0x3b4] ss:$8 sps:$4 sm:$0xff]  }
 0x238   : > { %v1489_v6 = vadd.f32 %v1488_v49, %v4600_v41  ;;  %v1490_v0 = vpop.f32.mrb[79].mxu1  ;;  %2897 = vmatmul.mubr.bf16.gmra.mrb[8].mxu0 %v1794_v38  ;;  %v1698_v52 = vmax.f32 %v1485_v18, 0.0 }
 0x239   : > { %v1491_v26 = vadd.f32 %v1490_v0, %v4603_v22  ;;  %2966 = vmatpush1.bf16.msra.mxu0 %v3908_v15  ;;  %v1699_v45 = vmax.f32 %v1487_v61, 0.0  ;;  %v3929_v61 = vld [vmem:[#allocation8 + $0x3b0] ss:$8 sps:$4 sm:$0xff]   ;;  %v3934_v0 = vld [vmem:[#allocation8 + $0x3c4] ss:$8 sps:$4 sm:$0xff]  }
 0x23a   : > { %v1706_v53 = vmax.f32 %v1489_v6, 0.0  ;;  %2967 = vmatprep.subr.bf16.mxu0 %v3913_v3 }
 0x23b   : > { %v1707_v17 = vmax.f32 %v1491_v26, 0.0 }
 0x23c   : > { %v1802_v55 = vpack.c.bf16 %v1706_v53, %v1698_v52 }
 0x23d   : > { %v1803_v28 = vpack.c.bf16 %v1707_v17, %v1699_v45  ;;  %v1494_v56 = vpop.f32.mrb[80].mxu1  ;;  %2968 = vmatpush1.bf16.msra.mxu0 %v3911_v51  ;;  %v3932_v45 = vld [vmem:[#allocation8 + $0x3c0] ss:$8 sps:$4 sm:$0xff]  }
 0x23e   : > { %v1495_v58 = vadd.f32 %v1494_v56, %v4600_v41  ;;  %v1496_v59 = vpop.f32.mrb[81].mxu1  ;;  %2969 = vmatprep.subr.bf16.mxu0 %v3916_v54  ;;  %v460_v56 = vsub.s32 6, %v4497_v43 }
 0x23f   : > { %v1497_v62 = vadd.f32 %v1496_v59, %v4603_v22  ;;  %v1498_v63 = vpop.f32.mrb[82].mxu1  ;;  %2906 = vmatprep.mubr.bf16.mxu0 %v1803_v28  ;;  %v3937_v28 = vld [vmem:[#allocation8 + $0x3d4] ss:$8 sps:$4 sm:$0xff]   ;;  %v464_v59 = vsub.s32 7, %v4497_v43 }
 0x240   : > { %v1499_v13 = vadd.f32 %v1498_v63, %v4600_v41  ;;  %v1500_v1 = vpop.f32.mrb[83].mxu1  ;;  %2907 = vmatmul.mubr.bf16.gmra.mrb[12].mxu0 %v1802_v55  ;;  %v1714_v36 = vmax.f32 %v1495_v58, 0.0 }
 0x241   : > { %v1501_v19 = vadd.f32 %v1500_v1, %v4603_v22  ;;  %2970 = vmatpush1.bf16.msra.mxu0 %v3914_v57  ;;  %v1715_v8 = vmax.f32 %v1497_v62, 0.0 }
 0x242   : > { %v1722_v39 = vmax.f32 %v1499_v13, 0.0  ;;  %2971 = vmatprep.subr.bf16.mxu0 %v3919_v60  ;;  %v3935_v13 = vld [vmem:[#allocation8 + $0x3d0] ss:$8 sps:$4 sm:$0xff]  }
 0x243   : > { %v1723_v5 = vmax.f32 %v1501_v19, 0.0 }
 0x244   : > { %v1810_v9 = vpack.c.bf16 %v1722_v39, %v1714_v36  ;;  %v3940_v39 = vld [vmem:[#allocation8 + $0x3e4] ss:$8 sps:$4 sm:$0xff]  }
 0x245   : > { %v1811_v10 = vpack.c.bf16 %v1723_v5, %v1715_v8  ;;  %v1504_v7 = vpop.f32.mrb[84].mxu1  ;;  %2972 = vmatpush1.bf16.msra.mxu0 %v3917_v2  ;;  %v3945_v2 = vld [vmem:[#allocation7] sm:$0xff] }
 0x246   : > { %v1505_v12 = vadd.f32 %v1504_v7, %v4600_v41  ;;  %v1506_v14 = vpop.f32.mrb[85].mxu1  ;;  %2973 = vmatprep.subr.bf16.mxu0 %v3922_v4  ;;  %v4639_v36 = vrot.slane %v3945_v2, %v460_v56  ;;  %v4641_v5 = vrot.slane %v3945_v2, %v464_v59  ;;  %v3938_v7 = vld [vmem:[#allocation8 + $0x3e0] ss:$8 sps:$4 sm:$0xff]  }
 0x247   : > { %v1507_v20 = vadd.f32 %v1506_v14, %v4603_v22  ;;  %v1508_v21 = vpop.f32.mrb[86].mxu1  ;;  %2916 = vmatprep.mubr.bf16.mxu0 %v1811_v10 }
 0x248   : > { %v1509_v32 = vadd.f32 %v1508_v21, %v4600_v41  ;;  %v1510_v23 = vpop.f32.mrb[87].mxu1  ;;  %2917 = vmatmul.mubr.bf16.gmra.mrb[16].mxu0 %v1810_v9  ;;  %v1730_v47 = vmax.f32 %v1505_v12, 0.0  ;;  %v3943_v12 = vld [vmem:[#allocation8 + $0x3f4] ss:$8 sps:$4 sm:$0xff]  }
 0x249   : > { %v1511_v24 = vadd.f32 %v1510_v23, %v4603_v22  ;;  %2974 = vmatpush1.bf16.msra.mxu0 %v3920_v11  ;;  %v1731_v29 = vmax.f32 %v1507_v20, 0.0  ;;  %v3941_v23 = vld [vmem:[#allocation8 + $0x3f0] ss:$8 sps:$4 sm:$0xff]  }
 0x24a   : > { %v1738_v27 = vmax.f32 %v1509_v32, 0.0  ;;  %2975 = vmatprep.subr.bf16.mxu0 %v3925_v16 }
 0x24b   : > { %v1739_v30 = vmax.f32 %v1511_v24, 0.0 }
 0x24c   : > { %v1818_v31 = vpack.c.bf16 %v1738_v27, %v1730_v47 }
 0x24d   : > { %v1819_v33 = vpack.c.bf16 %v1739_v30, %v1731_v29  ;;  %v1514_v34 = vpop.f32.mrb[88].mxu1  ;;  %2976 = vmatpush1.bf16.msra.mxu0 %v3923_v25 }
 0x24e   : > { %v1515_v37 = vadd.f32 %v1514_v34, %v4600_v41  ;;  %v1516_v38 = vpop.f32.mrb[89].mxu1  ;;  %2977 = vmatprep.subr.bf16.mxu0 %v3928_v50 }
 0x24f   : > { %v1517_v42 = vadd.f32 %v1516_v38, %v4603_v22  ;;  %v1518_v15 = vpop.f32.mrb[90].mxu1  ;;  %2926 = vmatprep.mubr.bf16.mxu0 %v1819_v33 }
 0x250   : > { %v1519_v18 = vadd.f32 %v1518_v15, %v4600_v41  ;;  %v1520_v48 = vpop.f32.mrb[91].mxu1  ;;  %2927 = vmatmul.mubr.bf16.gmra.mrb[20].mxu0 %v1818_v31  ;;  %v1746_v49 = vmax.f32 %v1515_v37, 0.0 }
 0x251   : > { %v1521_v3 = vadd.f32 %v1520_v48, %v4603_v22  ;;  %2978 = vmatpush1.bf16.msra.mxu0 %v3926_v35  ;;  %v1747_v26 = vmax.f32 %v1517_v42, 0.0 }
 0x252   : > { %v1754_v6 = vmax.f32 %v1519_v18, 0.0  ;;  %2979 = vmatprep.subr.bf16.mxu0 %v3931_v40 }
 0x253   : > { %v1755_v51 = vmax.f32 %v1521_v3, 0.0 }
 0x254   : > { %v1826_v52 = vpack.c.bf16 %v1754_v6, %v1746_v49 }
 0x255   : > { %v1827_v53 = vpack.c.bf16 %v1755_v51, %v1747_v26  ;;  %v1524_v54 = vpop.f32.mrb[92].mxu1  ;;  %2980 = vmatpush1.bf16.msra.mxu0 %v3929_v61 }
 0x256   : > { %v1525_v17 = vadd.f32 %v1524_v54, %v4600_v41  ;;  %v1526_v55 = vpop.f32.mrb[93].mxu1  ;;  %2981 = vmatprep.subr.bf16.mxu0 %v3934_v0 }
 0x257   : > { %v1527_v57 = vadd.f32 %v1526_v55, %v4603_v22  ;;  %v1528_v58 = vpop.f32.mrb[94].mxu1  ;;  %2936 = vmatprep.mubr.bf16.mxu0 %v1827_v53 }
 0x258   : > { %v1529_v60 = vadd.f32 %v1528_v58, %v4600_v41  ;;  %v1530_v62 = vpop.f32.mrb[95].mxu1  ;;  %2937 = vmatmul.mubr.bf16.gmra.mrb[24].mxu0 %v1826_v52  ;;  %v1762_v1 = vmax.f32 %v1525_v17, 0.0 }
 0x259   : > { %v1531_v63 = vadd.f32 %v1530_v62, %v4603_v22  ;;  %2982 = vmatpush1.bf16.msra.mxu0 %v3932_v45  ;;  %v1763_v4 = vmax.f32 %v1527_v57, 0.0 }
 0x25a   : > { %v1770_v19 = vmax.f32 %v1529_v60, 0.0  ;;  %2983 = vmatprep.subr.bf16.mxu0 %v3937_v28 }
 0x25b   : > { %v1771_v8 = vmax.f32 %v1531_v63, 0.0 }
 0x25c   : > { %v1834_v9 = vpack.c.bf16 %v1770_v19, %v1762_v1 }
 0x25d   : > { %v1835_v10 = vpack.c.bf16 %v1771_v8, %v1763_v4  ;;  %v1567_v41 = vpop.f32.mrb[96].mxu1  ;;  %2984 = vmatpush1.bf16.msra.mxu0 %v3935_v13 }
 0x25e   : > { %v1568_v22 = vadd.f32 %v1567_v41, %v4639_v36  ;;  %v1569_v11 = vpop.f32.mrb[97].mxu1  ;;  %2985 = vmatprep.subr.bf16.mxu0 %v3940_v39 }
 0x25f   : > { %v1570_v14 = vadd.f32 %v1569_v11, %v4641_v5  ;;  %v1571_v16 = vpop.f32.mrb[98].mxu1  ;;  %2946 = vmatprep.mubr.bf16.mxu0 %v1835_v10 }
 0x260   : > { %v1572_v20 = vadd.f32 %v1571_v16, %v4639_v36  ;;  %v1573_v21 = vpop.f32.mrb[99].mxu1  ;;  %2947 = vmatmul.mubr.bf16.gmra.mrb[28].mxu0 %v1834_v9  ;;  %v1652_v24 = vmax.f32 %v1568_v22, 0.0 }
 0x261   : > { %v1574_v32 = vadd.f32 %v1573_v21, %v4641_v5  ;;  %2986 = vmatpush1.bf16.msra.mxu0 %v3938_v7  ;;  %v1653_v47 = vmax.f32 %v1570_v14, 0.0 }
 0x262   : > { %v1660_v25 = vmax.f32 %v1572_v20, 0.0  ;;  %2987 = vmatprep.subr.bf16.mxu0 %v3943_v12 }
 0x263   : > { %v1661_v27 = vmax.f32 %v1574_v32, 0.0 }
 0x264   : > { %v1780_v50 = vpack.c.bf16 %v1660_v25, %v1652_v24 }
 0x265   : > { %v1781_v29 = vpack.c.bf16 %v1661_v27, %v1653_v47  ;;  %v1577_v30 = vpop.f32.mrb[100].mxu1  ;;  %2988 = vmatpush1.bf16.msra.mxu0 %v3941_v23 }
 0x266   : > { %v1578_v31 = vadd.f32 %v1577_v30, %v4639_v36  ;;  %v1579_v33 = vpop.f32.mrb[101].mxu1 }
 0x267   : > { %v1580_v34 = vadd.f32 %v1579_v33, %v4641_v5  ;;  %v1581_v35 = vpop.f32.mrb[102].mxu1  ;;  %2989 = vmatprep.mubr.bf16.mxu0 %v1781_v29 }
 0x268   : > { %v1582_v37 = vadd.f32 %v1581_v35, %v4639_v36  ;;  %v1583_v38 = vpop.f32.mrb[103].mxu1  ;;  %2990 = vmatmul.mubr.bf16.vlgmr.msra.gmra.mrb[0].mxu0 %v1780_v50  ;;  %v1668_v42 = vmax.f32 %v1578_v31, 0.0 }
 0x269   : > { %v1584_v40 = vadd.f32 %v1583_v38, %v4641_v5  ;;  %v1669_v18 = vmax.f32 %v1580_v34, 0.0 }
 0x26a   : > { %v1676_v15 = vmax.f32 %v1582_v37, 0.0 }
 0x26b   : > { %v1677_v48 = vmax.f32 %v1584_v40, 0.0 }
 0x26c   : > { %v1788_v3 = vpack.c.bf16 %v1676_v15, %v1668_v42 }
 0x26d   : > { %v1789_v61 = vpack.c.bf16 %v1677_v48, %v1669_v18  ;;  %v1587_v49 = vpop.f32.mrb[104].mxu1 }
 0x26e   : > { %v1588_v6 = vadd.f32 %v1587_v49, %v4639_v36  ;;  %v1589_v0 = vpop.f32.mrb[105].mxu1 }
 0x26f   : > { %v1590_v26 = vadd.f32 %v1589_v0, %v4641_v5  ;;  %v1591_v51 = vpop.f32.mrb[106].mxu1  ;;  %2999 = vmatprep.mubr.bf16.mxu0 %v1789_v61 }
 0x270   : > { %v1592_v52 = vadd.f32 %v1591_v51, %v4639_v36  ;;  %v1593_v53 = vpop.f32.mrb[107].mxu1  ;;  %3000 = vmatmul.mubr.bf16.gmra.mrb[4].mxu0 %v1788_v3  ;;  %v1684_v45 = vmax.f32 %v1588_v6, 0.0 }
 0x271   : > { %v1594_v54 = vadd.f32 %v1593_v53, %v4641_v5  ;;  %v1685_v55 = vmax.f32 %v1590_v26, 0.0 }
 0x272   : > { %v1692_v17 = vmax.f32 %v1592_v52, 0.0 }
 0x273   : > { %v1693_v28 = vmax.f32 %v1594_v54, 0.0 }
 0x274   : > { %v1796_v56 = vpack.c.bf16 %v1692_v17, %v1684_v45 }
 0x275   : > { %v1797_v57 = vpack.c.bf16 %v1693_v28, %v1685_v55  ;;  %v1597_v58 = vpop.f32.mrb[108].mxu1 }
 0x276   : > { %v1598_v59 = vadd.f32 %v1597_v58, %v4639_v36  ;;  %v1599_v60 = vpop.f32.mrb[109].mxu1 }
 0x277   : > { %v1600_v62 = vadd.f32 %v1599_v60, %v4641_v5  ;;  %v1601_v63 = vpop.f32.mrb[110].mxu1  ;;  %3009 = vmatprep.mubr.bf16.mxu0 %v1797_v57 }
 0x278   : > { %v1602_v13 = vadd.f32 %v1601_v63, %v4639_v36  ;;  %v1603_v1 = vpop.f32.mrb[111].mxu1  ;;  %3010 = vmatmul.mubr.bf16.gmra.mrb[8].mxu0 %v1796_v56  ;;  %v1700_v2 = vmax.f32 %v1598_v59, 0.0 }
 0x279   : > { %v1604_v19 = vadd.f32 %v1603_v1, %v4641_v5  ;;  %v1701_v4 = vmax.f32 %v1600_v62, 0.0 }
 0x27a   : > { %v1708_v39 = vmax.f32 %v1602_v13, 0.0 }
 0x27b   : > { %v1709_v8 = vmax.f32 %v1604_v19, 0.0 }
 0x27c   : > { %v1804_v9 = vpack.c.bf16 %v1708_v39, %v1700_v2 }
 0x27d   : > { %v1805_v10 = vpack.c.bf16 %v1709_v8, %v1701_v4  ;;  %v1607_v41 = vpop.f32.mrb[112].mxu1  ;;  %v1966_v8 = vld [vmem:[%s4808_s4] sm:$0x3] }
 0x27e   : > { %v1608_v7 = vadd.f32 %v1607_v41, %v4639_v36  ;;  %v1609_v22 = vpop.f32.mrb[113].mxu1 }
 0x27f   : > { %v1610_v11 = vadd.f32 %v1609_v22, %v4641_v5  ;;  %v1611_v12 = vpop.f32.mrb[114].mxu1  ;;  %3019 = vmatprep.mubr.bf16.mxu0 %v1805_v10 }
 0x280   : > { %v1612_v14 = vadd.f32 %v1611_v12, %v4639_v36  ;;  %v1613_v16 = vpop.f32.mrb[115].mxu1  ;;  %3020 = vmatmul.mubr.bf16.gmra.mrb[12].mxu0 %v1804_v9  ;;  %v1716_v21 = vmax.f32 %v1608_v7, 0.0 }
 0x281   : > { %v1614_v20 = vadd.f32 %v1613_v16, %v4641_v5  ;;  %v1717_v23 = vmax.f32 %v1610_v11, 0.0 }
 0x282   : > { %v1724_v32 = vmax.f32 %v1612_v14, 0.0 }
 0x283   : > { %v1725_v24 = vmax.f32 %v1614_v20, 0.0 }
 0x284   : > { %v1812_v25 = vpack.c.bf16 %v1724_v32, %v1716_v21 }
 0x285   : > { %v1813_v47 = vpack.c.bf16 %v1725_v24, %v1717_v23  ;;  %v1617_v27 = vpop.f32.mrb[116].mxu1 }
 0x286   : > { %v1618_v50 = vadd.f32 %v1617_v27, %v4639_v36  ;;  %v1619_v29 = vpop.f32.mrb[117].mxu1 }
 0x287   : > { %v1620_v30 = vadd.f32 %v1619_v29, %v4641_v5  ;;  %v1621_v31 = vpop.f32.mrb[118].mxu1  ;;  %3029 = vmatprep.mubr.bf16.mxu0 %v1813_v47 }
 0x288   : > { %v1622_v33 = vadd.f32 %v1621_v31, %v4639_v36  ;;  %v1623_v34 = vpop.f32.mrb[119].mxu1  ;;  %3030 = vmatmul.mubr.bf16.gmra.mrb[16].mxu0 %v1812_v25  ;;  %v1732_v37 = vmax.f32 %v1618_v50, 0.0 }
 0x289   : > { %v1624_v35 = vadd.f32 %v1623_v34, %v4641_v5  ;;  %v1733_v40 = vmax.f32 %v1620_v30, 0.0 }
 0x28a   : > { %v1740_v38 = vmax.f32 %v1622_v33, 0.0 }
 0x28b   : > { %v1741_v42 = vmax.f32 %v1624_v35, 0.0 }
 0x28c   : > { %v1820_v15 = vpack.c.bf16 %v1740_v38, %v1732_v37 }
 0x28d   : > { %v1821_v18 = vpack.c.bf16 %v1741_v42, %v1733_v40  ;;  %v1627_v48 = vpop.f32.mrb[120].mxu1 }
 0x28e   : > { %v1628_v3 = vadd.f32 %v1627_v48, %v4639_v36  ;;  %v1629_v61 = vpop.f32.mrb[121].mxu1 }
 0x28f   : > { %v1630_v49 = vadd.f32 %v1629_v61, %v4641_v5  ;;  %v1631_v6 = vpop.f32.mrb[122].mxu1  ;;  %3039 = vmatprep.mubr.bf16.mxu0 %v1821_v18 }
 0x290   : > { %v1632_v0 = vadd.f32 %v1631_v6, %v4639_v36  ;;  %v1633_v26 = vpop.f32.mrb[123].mxu1  ;;  %3040 = vmatmul.mubr.bf16.gmra.mrb[20].mxu0 %v1820_v15  ;;  %v1748_v52 = vmax.f32 %v1628_v3, 0.0 }
 0x291   : > { %v1634_v51 = vadd.f32 %v1633_v26, %v4641_v5  ;;  %v1749_v54 = vmax.f32 %v1630_v49, 0.0 }
 0x292   : > { %v1756_v53 = vmax.f32 %v1632_v0, 0.0 }
 0x293   : > { %v1757_v45 = vmax.f32 %v1634_v51, 0.0 }
 0x294   : > { %v1828_v17 = vpack.c.bf16 %v1756_v53, %v1748_v52 }
 0x295   : > { %v1829_v55 = vpack.c.bf16 %v1757_v45, %v1749_v54  ;;  %v1637_v28 = vpop.f32.mrb[124].mxu1 }
 0x296   : > { %v1638_v56 = vadd.f32 %v1637_v28, %v4639_v36  ;;  %v1639_v57 = vpop.f32.mrb[125].mxu1 }
 0x297   : > { %v1640_v58 = vadd.f32 %v1639_v57, %v4641_v5  ;;  %v1641_v59 = vpop.f32.mrb[126].mxu1  ;;  %3049 = vmatprep.mubr.bf16.mxu0 %v1829_v55 }
 0x298   : > { %v1642_v60 = vadd.f32 %v1641_v59, %v4639_v36  ;;  %v1643_v62 = vpop.f32.mrb[127].mxu1  ;;  %3050 = vmatmul.mubr.bf16.gmra.mrb[24].mxu0 %v1828_v17  ;;  %v1764_v13 = vmax.f32 %v1638_v56, 0.0  ;;  %v4681_v36 = vrot.slane %v1966_v8, %v436_v44 }
 0x299   : > { %v1644_v63 = vadd.f32 %v1643_v62, %v4641_v5  ;;  %v1765_v19 = vmax.f32 %v1640_v58, 0.0  ;;  %v4685_v5 = vrot.slane %v1966_v8, %v440_v46 }
 0x29a   : > { %v1772_v1 = vmax.f32 %v1642_v60, 0.0 }
 0x29b   : > { %v1773_v2 = vmax.f32 %v1644_v63, 0.0 }
 0x29c   : > { %v1836_v39 = vpack.c.bf16 %v1772_v1, %v1764_v13 }
 0x29d   : > { %v1837_v4 = vpack.c.bf16 %v1773_v2, %v1765_v19 }
 0x29f   : > { %3059 = vmatprep.mubr.bf16.mxu0 %v1837_v4 }
 0x2a0   : > { %3060 = vmatmul.mubr.bf16.gmra.mrb[28].mxu0 %v1836_v39 }
 0x33b   : > { %v2991_v9 = vpop.f32.mrb[0].mxu0 }
 0x33c   : > { %v3517_v10 = vadd.f32 %v2991_v9, %v4681_v36  ;;  %v2993_v41 = vpop.f32.mrb[1].mxu0 }
 0x33d   : > { %v3518_v7 = vadd.f32 %v2993_v41, %v4685_v5  ;;  %v2995_v22 = vpop.f32.mrb[2].mxu0 }
 0x33e   : > { %3070 = vst [vmem:[%s4689_s14] sm:$0xff] %v3517_v10  ;;  %v3519_v43 = vadd.f32 %v2995_v22, %v4681_v36  ;;  %v2997_v44 = vpop.f32.mrb[3].mxu0 }
 0x33f   : > { %3071 = vst [vmem:[%s4689_s14 + $0x8] sm:$0xff] %v3518_v7  ;;  %v3520_v46 = vadd.f32 %v2997_v44, %v4685_v5 }
 0x340   : > { %3072 = vst [vmem:[%s4689_s14 + $0x10] sm:$0xff] %v3519_v43 }
 0x341   : > { %3073 = vst [vmem:[%s4689_s14 + $0x18] sm:$0xff] %v3520_v46 }
 0x343   : > { %v3001_v11 = vpop.f32.mrb[4].mxu0 }
 0x344   : > { %v3521_v12 = vadd.f32 %v3001_v11, %v4681_v36  ;;  %v3003_v14 = vpop.f32.mrb[5].mxu0 }
 0x345   : > { %v3522_v16 = vadd.f32 %v3003_v14, %v4685_v5  ;;  %v3005_v20 = vpop.f32.mrb[6].mxu0 }
 0x346   : > { %3074 = vst [vmem:[%s4689_s14 + $0x20] sm:$0xff] %v3521_v12  ;;  %v3523_v21 = vadd.f32 %v3005_v20, %v4681_v36  ;;  %v3007_v32 = vpop.f32.mrb[7].mxu0 }
 0x347   : > { %3075 = vst [vmem:[%s4689_s14 + $0x28] sm:$0xff] %v3522_v16  ;;  %v3524_v23 = vadd.f32 %v3007_v32, %v4685_v5 }
 0x348   : > { %3076 = vst [vmem:[%s4689_s14 + $0x30] sm:$0xff] %v3523_v21 }
 0x349   : > { %3077 = vst [vmem:[%s4689_s14 + $0x38] sm:$0xff] %v3524_v23 }
 0x34b   : > { %v3011_v24 = vpop.f32.mrb[8].mxu0 }
 0x34c   : > { %v3525_v25 = vadd.f32 %v3011_v24, %v4681_v36  ;;  %v3013_v47 = vpop.f32.mrb[9].mxu0 }
 0x34d   : > { %v3526_v27 = vadd.f32 %v3013_v47, %v4685_v5  ;;  %v3015_v50 = vpop.f32.mrb[10].mxu0 }
 0x34e   : > { %3078 = vst [vmem:[%s4689_s14 + $0x40] sm:$0xff] %v3525_v25  ;;  %v3527_v29 = vadd.f32 %v3015_v50, %v4681_v36  ;;  %v3017_v30 = vpop.f32.mrb[11].mxu0 }
 0x34f   : > { %3079 = vst [vmem:[%s4689_s14 + $0x48] sm:$0xff] %v3526_v27  ;;  %v3528_v31 = vadd.f32 %v3017_v30, %v4685_v5 }
 0x350   : > { %3080 = vst [vmem:[%s4689_s14 + $0x50] sm:$0xff] %v3527_v29 }
 0x351   : > { %3081 = vst [vmem:[%s4689_s14 + $0x58] sm:$0xff] %v3528_v31 }
 0x353   : > { %v3021_v33 = vpop.f32.mrb[12].mxu0 }
 0x354   : > { %v3529_v34 = vadd.f32 %v3021_v33, %v4681_v36  ;;  %v3023_v35 = vpop.f32.mrb[13].mxu0 }
 0x355   : > { %v3530_v37 = vadd.f32 %v3023_v35, %v4685_v5  ;;  %v3025_v38 = vpop.f32.mrb[14].mxu0 }
 0x356   : > { %3082 = vst [vmem:[%s4689_s14 + $0x60] sm:$0xff] %v3529_v34  ;;  %v3531_v40 = vadd.f32 %v3025_v38, %v4681_v36  ;;  %v3027_v42 = vpop.f32.mrb[15].mxu0 }
 0x357   : > { %3083 = vst [vmem:[%s4689_s14 + $0x68] sm:$0xff] %v3530_v37  ;;  %v3532_v15 = vadd.f32 %v3027_v42, %v4685_v5 }
 0x358   : > { %3084 = vst [vmem:[%s4689_s14 + $0x70] sm:$0xff] %v3531_v40 }
 0x359   : > { %3085 = vst [vmem:[%s4689_s14 + $0x78] sm:$0xff] %v3532_v15 }
 0x35b   : > { %v3031_v18 = vpop.f32.mrb[16].mxu0 }
 0x35c   : > { %v3533_v48 = vadd.f32 %v3031_v18, %v4681_v36  ;;  %v3033_v3 = vpop.f32.mrb[17].mxu0 }
 0x35d   : > { %v3534_v61 = vadd.f32 %v3033_v3, %v4685_v5  ;;  %v3035_v49 = vpop.f32.mrb[18].mxu0 }
 0x35e   : > { %3086 = vst [vmem:[%s4689_s14 + $0x80] sm:$0xff] %v3533_v48  ;;  %v3535_v6 = vadd.f32 %v3035_v49, %v4681_v36  ;;  %v3037_v0 = vpop.f32.mrb[19].mxu0 }
 0x35f   : > { %3087 = vst [vmem:[%s4689_s14 + $0x88] sm:$0xff] %v3534_v61  ;;  %v3536_v26 = vadd.f32 %v3037_v0, %v4685_v5 }
 0x360   : > { %3088 = vst [vmem:[%s4689_s14 + $0x90] sm:$0xff] %v3535_v6 }
 0x361   : > { %3089 = vst [vmem:[%s4689_s14 + $0x98] sm:$0xff] %v3536_v26 }
 0x363   : > { %v3041_v51 = vpop.f32.mrb[20].mxu0 }
 0x364   : > { %v3537_v52 = vadd.f32 %v3041_v51, %v4681_v36  ;;  %v3043_v53 = vpop.f32.mrb[21].mxu0 }
 0x365   : > { %v3538_v54 = vadd.f32 %v3043_v53, %v4685_v5  ;;  %v3045_v45 = vpop.f32.mrb[22].mxu0 }
 0x366   : > { %3090 = vst [vmem:[%s4689_s14 + $0xa0] sm:$0xff] %v3537_v52  ;;  %v3539_v17 = vadd.f32 %v3045_v45, %v4681_v36  ;;  %v3047_v55 = vpop.f32.mrb[23].mxu0 }
 0x367   : > { %3091 = vst [vmem:[%s4689_s14 + $0xa8] sm:$0xff] %v3538_v54  ;;  %v3540_v28 = vadd.f32 %v3047_v55, %v4685_v5 }
 0x368   : > { %3092 = vst [vmem:[%s4689_s14 + $0xb0] sm:$0xff] %v3539_v17 }
 0x369   : > { %3093 = vst [vmem:[%s4689_s14 + $0xb8] sm:$0xff] %v3540_v28 }
 0x36b   : > { %v3051_v56 = vpop.f32.mrb[24].mxu0 }
 0x36c   : > { %v3541_v57 = vadd.f32 %v3051_v56, %v4681_v36  ;;  %v3053_v58 = vpop.f32.mrb[25].mxu0 }
 0x36d   : > { %v3542_v59 = vadd.f32 %v3053_v58, %v4685_v5  ;;  %v3055_v60 = vpop.f32.mrb[26].mxu0 }
 0x36e   : > { %3094 = vst [vmem:[%s4689_s14 + $0xc0] sm:$0xff] %v3541_v57  ;;  %v3543_v62 = vadd.f32 %v3055_v60, %v4681_v36  ;;  %v3057_v63 = vpop.f32.mrb[27].mxu0 }
 0x36f   : > { %3095 = vst [vmem:[%s4689_s14 + $0xc8] sm:$0xff] %v3542_v59  ;;  %v3544_v13 = vadd.f32 %v3057_v63, %v4685_v5 }
 0x370   : > { %3096 = vst [vmem:[%s4689_s14 + $0xd0] sm:$0xff] %v3543_v62 }
 0x371   : > { %3097 = vst [vmem:[%s4689_s14 + $0xd8] sm:$0xff] %v3544_v13 }
 0x373   : > { %v3061_v1 = vpop.f32.mrb[28].mxu0 }
 0x374   : > { %v3545_v19 = vadd.f32 %v3061_v1, %v4681_v36  ;;  %v3063_v2 = vpop.f32.mrb[29].mxu0 }
 0x375   : > { %v3546_v39 = vadd.f32 %v3063_v2, %v4685_v5  ;;  %v3065_v4 = vpop.f32.mrb[30].mxu0 }
 0x376   : > { %3098 = vst [vmem:[%s4689_s14 + $0xe0] sm:$0xff] %v3545_v19  ;;  %v3547_v8 = vadd.f32 %v3065_v4, %v4681_v36  ;;  %v3067_v9 = vpop.f32.mrb[31].mxu0 }
 0x377   : > { %3099 = vst [vmem:[%s4689_s14 + $0xe8] sm:$0xff] %v3546_v39  ;;  %v3548_v10 = vadd.f32 %v3067_v9, %v4685_v5 }
 0x378   : > { %3100 = vst [vmem:[%s4689_s14 + $0xf0] sm:$0xff] %v3547_v8 }
 0x379   : > { %3101 = vst [vmem:[%s4689_s14 + $0xf8] sm:$0xff] %v3548_v10 }
 0x37a   : > { %4073 = shalt.err (!%p4070_p4)
}
 0x37b   : > { %s4074_s9 = scalar_lea.hbm %s4754_s30, 4096  ;;  %s4078_s26 = scalar_lea.hbm %s4809_s5, 8192 }
 0x37c   : > { %p4075_p9 = scmp.ne.s32.totalorder %s4754_s30, %s4074_s9  ;;  %p4079_p8 = scmp.lt.u32.totalorder %s4754_s30, %s4809_s5 }
 0x37d   : > { %p4080_p13 = scmp.lt.u32.totalorder %s4078_s26, %s4074_s9  ;;  %p4082_p10 = scmp.lt.u32.totalorder %s4074_s9, %s4754_s30 }
 0x37e   : > { %p4076_p0 = pnand %p4075_p9, %p4325_p5 }
 0x37f   : > { %p4081_p6 = por %p4080_p13, %p4079_p8 }
 0x380   : > { %p4077_p11 = pneg %p4076_p0 }
 0x381   : > { %p4083_p3 = por %p4082_p10, %p4081_p6 }
 0x383   : > { %p4084_p7 = pnand %p4083_p3, %p4077_p11 }
 0x385   : > { %4087 = shalt.err (!%p4084_p7)
}
 0x386   : > { %s4145_s11 = smov 256   ;;  %s4146_s15 = smov 16  }
 0x387   : > { %3659 = dma.vmem_to_hbm [thread:$0]  (%p4325_p5), %s4756_s13, 4096, %s4754_s30, %s3103_s22, %s4145_s11, %s4145_s11, %s4146_s15  }
 0x388 PF: > { %s3132_s16 = sand.u32 1, %s4122_s18   ;;  %p4827_p12 = scmp.ne.s32.totalorder %s4814_s25, 0 }
 0x389   : > { %p4828_p2 = scmp.ge.s32.totalorder %s4134_s21, 2  ;;  %s3133_s12 = scalar_lea.sflag [#allocation4], %s3132_s16 }
 0x38b   : > { %p3676_p1 = pnand %p4828_p2, %p4827_p12 }
 0x38d   : > { %4117 = dma.done.wait (!%p3676_p1), %s3133_s12, 4096  }
 0x38e   : > { %4119 = vsyncadd (!%p3676_p1), %s3133_s12, 4294963200  ;;  %p20_p4 = scmp.ge.s32.totalorder %s4311_s28, 4   ;;  %s4829_s18 = smov %s4126_s19 }
 0x38f   : > { %s4830_s19 = smov %s4130_s20  ;;  %s4831_s20 = smov %s4321_s27 }
 0x390   : > { %s4832_s21 = smov %s4311_s28  ;;  %22 = sbr.rel (!%p20_p4) target bundleno = 7 (0x7), region = 97 }
 0x397   :  { %3138 = vsyncpa [#allocation3], 1 }
 0x398   :  { %3140 = vsyncpa [#allocation3 + $0x1], 1 }
 0x399   :  { %3141 = vsyncpa [#allocation6], 1 }
 0x39a   :  { %3142 = vsyncpa [#allocation9], 1 }
 0x39b   :  { %3143 = vsyncpa [#allocation4], 1 }
 0x39c   :  { %3145 = vsyncpa [#allocation4 + $0x1], 1 }

</bundles_post_ra>
